<compile_context>
chip_gen: v7x
topology: tpu7x:2x2x1
jax: 0.10.0
libtpu: 0.0.40
codegen_flags: <defaults>
</compile_context>

<pallas_src>
import jax
import jax.numpy as jnp
from jax.experimental import pallas as pl
from jax.experimental.pallas import tpu as pltpu

# Layer dimensions (fan_in, fan_out) matching the PyTorch module.
DIMS = [(1, 5), (5, 10), (10, 10), (10, 5), (5, 1)]


def _param_offsets():
    """Static offsets of each layer's (W, b) inside the packed 1-D param vector.

    Weights are stored row-major in PyTorch orientation (out, in), followed by
    the bias (out,). So W[j, k] lives at w_off + j*fan_in + k and b[j] at
    b_off + j.
    """
    offs = []
    o = 0
    for fan_in, fan_out in DIMS:
        w_off = o
        o += fan_in * fan_out
        b_off = o
        o += fan_out
        offs.append((w_off, b_off))
    return offs, o


OFFSETS, PARAM_COUNT = _param_offsets()  # PARAM_COUNT == 241


def mlp_kernel(params_ref, x_ref, o_ref):
    """Fused forward pass.

    params_ref : SMEM (PARAM_COUNT,) f32 -- packed [W1,b1,W2,b2,...,W5,b5]
    x_ref      : VMEM (1, N) f32         -- batch on lanes
    o_ref      : VMEM (1, N) f32
    """
    # Current activation: a Python list of (1, N) rows (fan_in rows).
    h = [x_ref[...]]

    for li, ((fan_in, fan_out), (w_off, b_off)) in enumerate(zip(DIMS, OFFSETS)):
        last_layer = li == len(DIMS) - 1
        new_h = []
        for j in range(fan_out):
            # Fold the bias into the first FMA: acc = W[j,0]*h[0] + b[j]
            acc = h[0] * params_ref[w_off + j * fan_in] + params_ref[b_off + j]
            for k in range(1, fan_in):
                acc = acc + params_ref[w_off + j * fan_in + k] * h[k]
            if not last_layer:
                acc = jnp.maximum(acc, 0.0)
            new_h.append(acc)
        h = new_h

    # Final layer has fan_out == 1 -> single (1, N) row, lane-dense store.
    o_ref[...] = h[0]


def pack_params(params):
    """params: list of (W (out,in), b (out,)) -> one flat f32 vector."""
    flat = []
    for w, b in params:
        flat.append(w.reshape(-1))
        flat.append(b.reshape(-1))
    packed = jnp.concatenate(flat).astype(jnp.float32)
    assert packed.shape == (PARAM_COUNT,)
    return packed


def mlp_forward(x, params):
    """x: (N, 1) or (N,) float32. Returns (N, 1) float32."""
    x_t = x.reshape(1, -1).astype(jnp.float32)  # (1, N): batch on lanes
    n = x_t.shape[1]
    packed = pack_params(params)

    total_macs = sum(fi * fo for fi, fo in DIMS)  # 210 MACs per sample
    cost = pl.CostEstimate(
        flops=2 * total_macs * n,
        transcendentals=0,
        bytes_accessed=4 * (PARAM_COUNT + 2 * n),
    )

    y_t = pl.pallas_call(
        mlp_kernel,
        out_shape=jax.ShapeDtypeStruct((1, n), jnp.float32),
        in_specs=[
            pl.BlockSpec(memory_space=pltpu.MemorySpace.SMEM),  # packed params
            pl.BlockSpec(memory_space=pltpu.MemorySpace.VMEM),  # x (1, N)
        ],
        out_specs=pl.BlockSpec(memory_space=pltpu.MemorySpace.VMEM),
        cost_estimate=cost,
    )(packed, x_t)

    # Transpose back to PyTorch's (N, 1) output layout in the wrapper.
    return y_t.reshape(-1, 1)


def init_params(key):
    """Deterministic init mimicking nn.Linear's U(-1/sqrt(fan_in), 1/sqrt(fan_in)).

    Weights stored in PyTorch orientation: W is (out, in), b is (out,).
    """
    params = []
    for fan_in, fan_out in DIMS:
        key, kw, kb = jax.random.split(key, 3)
        bound = 1.0 / jnp.sqrt(jnp.float32(fan_in))
        w = jax.random.uniform(kw, (fan_out, fan_in), jnp.float32, -bound, bound)
        b = jax.random.uniform(kb, (fan_out,), jnp.float32, -bound, bound)
        params.append((w, b))
    return params


def reference_forward(x, params):
    """Pure-JAX reference matching the PyTorch module (x: (N, 1))."""
    h = x
    for i, (w, b) in enumerate(params):
        h = h @ w.T + b
        if i < len(params) - 1:
            h = jnp.maximum(h, 0.0)
    return h


if __name__ == "__main__":
    key = jax.random.PRNGKey(0)
    params = init_params(key)

    # Matches `x = torch.linspace(0, 10, 100)` reshaped to (N, 1) for Linear(1, 5).
    x = jnp.linspace(0.0, 10.0, 100, dtype=jnp.float32).reshape(-1, 1)

    y = mlp_forward(x, params)
    y = jax.block_until_ready(y)

    y_ref = reference_forward(x, params)
    assert y.shape == (100, 1)
    assert jnp.allclose(y, y_ref, atol=1e-4, rtol=1e-4)

    print("KERNEL_OK")
</pallas_src>

<mosaic_0001>
module attributes {stable_mosaic.version = 11 : i64} {
  func.func @mlp_kernel(%arg0: memref<241xf32, #tpu.memory_space<smem>>, %arg1: memref<1x100xf32, #tpu.memory_space<vmem>>, %arg2: memref<1x100xf32, #tpu.memory_space<vmem>>) attributes {dimension_semantics = [], scalar_prefetch = 0 : i64, scratch_operands = 0 : i64, tpu.core_type = #tpu.core_type<tc>} {
    %c0 = arith.constant 0 : index
    %c0_0 = arith.constant 0 : index
    %0 = vector.load %arg1[%c0, %c0_0] : memref<1x100xf32, #tpu.memory_space<vmem>>, vector<1x100xf32>
    %c0_1 = arith.constant 0 : index
    %1 = memref.load %arg0[%c0_1] : memref<241xf32, #tpu.memory_space<smem>>
    %2 = vector.broadcast %1 : f32 to vector<1x100xf32>
    %3 = arith.mulf %0, %2 : vector<1x100xf32>
    %c5 = arith.constant 5 : index
    %4 = memref.load %arg0[%c5] : memref<241xf32, #tpu.memory_space<smem>>
    %5 = vector.broadcast %4 : f32 to vector<1x100xf32>
    %6 = arith.addf %3, %5 : vector<1x100xf32>
    %cst = arith.constant 0.000000e+00 : f32
    %7 = vector.broadcast %cst : f32 to vector<1x100xf32>
    %8 = arith.maximumf %6, %7 : vector<1x100xf32>
    %c1 = arith.constant 1 : index
    %9 = memref.load %arg0[%c1] : memref<241xf32, #tpu.memory_space<smem>>
    %10 = vector.broadcast %9 : f32 to vector<1x100xf32>
    %11 = arith.mulf %0, %10 : vector<1x100xf32>
    %c6 = arith.constant 6 : index
    %12 = memref.load %arg0[%c6] : memref<241xf32, #tpu.memory_space<smem>>
    %13 = vector.broadcast %12 : f32 to vector<1x100xf32>
    %14 = arith.addf %11, %13 : vector<1x100xf32>
    %cst_2 = arith.constant 0.000000e+00 : f32
    %15 = vector.broadcast %cst_2 : f32 to vector<1x100xf32>
    %16 = arith.maximumf %14, %15 : vector<1x100xf32>
    %c2 = arith.constant 2 : index
    %17 = memref.load %arg0[%c2] : memref<241xf32, #tpu.memory_space<smem>>
    %18 = vector.broadcast %17 : f32 to vector<1x100xf32>
    %19 = arith.mulf %0, %18 : vector<1x100xf32>
    %c7 = arith.constant 7 : index
    %20 = memref.load %arg0[%c7] : memref<241xf32, #tpu.memory_space<smem>>
    %21 = vector.broadcast %20 : f32 to vector<1x100xf32>
    %22 = arith.addf %19, %21 : vector<1x100xf32>
    %cst_3 = arith.constant 0.000000e+00 : f32
    %23 = vector.broadcast %cst_3 : f32 to vector<1x100xf32>
    %24 = arith.maximumf %22, %23 : vector<1x100xf32>
    %c3 = arith.constant 3 : index
    %25 = memref.load %arg0[%c3] : memref<241xf32, #tpu.memory_space<smem>>
    %26 = vector.broadcast %25 : f32 to vector<1x100xf32>
    %27 = arith.mulf %0, %26 : vector<1x100xf32>
    %c8 = arith.constant 8 : index
    %28 = memref.load %arg0[%c8] : memref<241xf32, #tpu.memory_space<smem>>
    %29 = vector.broadcast %28 : f32 to vector<1x100xf32>
    %30 = arith.addf %27, %29 : vector<1x100xf32>
    %cst_4 = arith.constant 0.000000e+00 : f32
    %31 = vector.broadcast %cst_4 : f32 to vector<1x100xf32>
    %32 = arith.maximumf %30, %31 : vector<1x100xf32>
    %c4 = arith.constant 4 : index
    %33 = memref.load %arg0[%c4] : memref<241xf32, #tpu.memory_space<smem>>
    %34 = vector.broadcast %33 : f32 to vector<1x100xf32>
    %35 = arith.mulf %0, %34 : vector<1x100xf32>
    %c9 = arith.constant 9 : index
    %36 = memref.load %arg0[%c9] : memref<241xf32, #tpu.memory_space<smem>>
    %37 = vector.broadcast %36 : f32 to vector<1x100xf32>
    %38 = arith.addf %35, %37 : vector<1x100xf32>
    %cst_5 = arith.constant 0.000000e+00 : f32
    %39 = vector.broadcast %cst_5 : f32 to vector<1x100xf32>
    %40 = arith.maximumf %38, %39 : vector<1x100xf32>
    %c10 = arith.constant 10 : index
    %41 = memref.load %arg0[%c10] : memref<241xf32, #tpu.memory_space<smem>>
    %42 = vector.broadcast %41 : f32 to vector<1x100xf32>
    %43 = arith.mulf %8, %42 : vector<1x100xf32>
    %c60 = arith.constant 60 : index
    %44 = memref.load %arg0[%c60] : memref<241xf32, #tpu.memory_space<smem>>
    %45 = vector.broadcast %44 : f32 to vector<1x100xf32>
    %46 = arith.addf %43, %45 : vector<1x100xf32>
    %c11 = arith.constant 11 : index
    %47 = memref.load %arg0[%c11] : memref<241xf32, #tpu.memory_space<smem>>
    %48 = vector.broadcast %47 : f32 to vector<1x100xf32>
    %49 = arith.mulf %48, %16 : vector<1x100xf32>
    %50 = arith.addf %46, %49 : vector<1x100xf32>
    %c12 = arith.constant 12 : index
    %51 = memref.load %arg0[%c12] : memref<241xf32, #tpu.memory_space<smem>>
    %52 = vector.broadcast %51 : f32 to vector<1x100xf32>
    %53 = arith.mulf %52, %24 : vector<1x100xf32>
    %54 = arith.addf %50, %53 : vector<1x100xf32>
    %c13 = arith.constant 13 : index
    %55 = memref.load %arg0[%c13] : memref<241xf32, #tpu.memory_space<smem>>
    %56 = vector.broadcast %55 : f32 to vector<1x100xf32>
    %57 = arith.mulf %56, %32 : vector<1x100xf32>
    %58 = arith.addf %54, %57 : vector<1x100xf32>
    %c14 = arith.constant 14 : index
    %59 = memref.load %arg0[%c14] : memref<241xf32, #tpu.memory_space<smem>>
    %60 = vector.broadcast %59 : f32 to vector<1x100xf32>
    %61 = arith.mulf %60, %40 : vector<1x100xf32>
    %62 = arith.addf %58, %61 : vector<1x100xf32>
    %cst_6 = arith.constant 0.000000e+00 : f32
    %63 = vector.broadcast %cst_6 : f32 to vector<1x100xf32>
    %64 = arith.maximumf %62, %63 : vector<1x100xf32>
    %c15 = arith.constant 15 : index
    %65 = memref.load %arg0[%c15] : memref<241xf32, #tpu.memory_space<smem>>
    %66 = vector.broadcast %65 : f32 to vector<1x100xf32>
    %67 = arith.mulf %8, %66 : vector<1x100xf32>
    %c61 = arith.constant 61 : index
    %68 = memref.load %arg0[%c61] : memref<241xf32, #tpu.memory_space<smem>>
    %69 = vector.broadcast %68 : f32 to vector<1x100xf32>
    %70 = arith.addf %67, %69 : vector<1x100xf32>
    %c16 = arith.constant 16 : index
    %71 = memref.load %arg0[%c16] : memref<241xf32, #tpu.memory_space<smem>>
    %72 = vector.broadcast %71 : f32 to vector<1x100xf32>
    %73 = arith.mulf %72, %16 : vector<1x100xf32>
    %74 = arith.addf %70, %73 : vector<1x100xf32>
    %c17 = arith.constant 17 : index
    %75 = memref.load %arg0[%c17] : memref<241xf32, #tpu.memory_space<smem>>
    %76 = vector.broadcast %75 : f32 to vector<1x100xf32>
    %77 = arith.mulf %76, %24 : vector<1x100xf32>
    %78 = arith.addf %74, %77 : vector<1x100xf32>
    %c18 = arith.constant 18 : index
    %79 = memref.load %arg0[%c18] : memref<241xf32, #tpu.memory_space<smem>>
    %80 = vector.broadcast %79 : f32 to vector<1x100xf32>
    %81 = arith.mulf %80, %32 : vector<1x100xf32>
    %82 = arith.addf %78, %81 : vector<1x100xf32>
    %c19 = arith.constant 19 : index
    %83 = memref.load %arg0[%c19] : memref<241xf32, #tpu.memory_space<smem>>
    %84 = vector.broadcast %83 : f32 to vector<1x100xf32>
    %85 = arith.mulf %84, %40 : vector<1x100xf32>
    %86 = arith.addf %82, %85 : vector<1x100xf32>
    %cst_7 = arith.constant 0.000000e+00 : f32
    %87 = vector.broadcast %cst_7 : f32 to vector<1x100xf32>
    %88 = arith.maximumf %86, %87 : vector<1x100xf32>
    %c20 = arith.constant 20 : index
    %89 = memref.load %arg0[%c20] : memref<241xf32, #tpu.memory_space<smem>>
    %90 = vector.broadcast %89 : f32 to vector<1x100xf32>
    %91 = arith.mulf %8, %90 : vector<1x100xf32>
    %c62 = arith.constant 62 : index
    %92 = memref.load %arg0[%c62] : memref<241xf32, #tpu.memory_space<smem>>
    %93 = vector.broadcast %92 : f32 to vector<1x100xf32>
    %94 = arith.addf %91, %93 : vector<1x100xf32>
    %c21 = arith.constant 21 : index
    %95 = memref.load %arg0[%c21] : memref<241xf32, #tpu.memory_space<smem>>
    %96 = vector.broadcast %95 : f32 to vector<1x100xf32>
    %97 = arith.mulf %96, %16 : vector<1x100xf32>
    %98 = arith.addf %94, %97 : vector<1x100xf32>
    %c22 = arith.constant 22 : index
    %99 = memref.load %arg0[%c22] : memref<241xf32, #tpu.memory_space<smem>>
    %100 = vector.broadcast %99 : f32 to vector<1x100xf32>
    %101 = arith.mulf %100, %24 : vector<1x100xf32>
    %102 = arith.addf %98, %101 : vector<1x100xf32>
    %c23 = arith.constant 23 : index
    %103 = memref.load %arg0[%c23] : memref<241xf32, #tpu.memory_space<smem>>
    %104 = vector.broadcast %103 : f32 to vector<1x100xf32>
    %105 = arith.mulf %104, %32 : vector<1x100xf32>
    %106 = arith.addf %102, %105 : vector<1x100xf32>
    %c24 = arith.constant 24 : index
    %107 = memref.load %arg0[%c24] : memref<241xf32, #tpu.memory_space<smem>>
    %108 = vector.broadcast %107 : f32 to vector<1x100xf32>
    %109 = arith.mulf %108, %40 : vector<1x100xf32>
    %110 = arith.addf %106, %109 : vector<1x100xf32>
    %cst_8 = arith.constant 0.000000e+00 : f32
    %111 = vector.broadcast %cst_8 : f32 to vector<1x100xf32>
    %112 = arith.maximumf %110, %111 : vector<1x100xf32>
    %c25 = arith.constant 25 : index
    %113 = memref.load %arg0[%c25] : memref<241xf32, #tpu.memory_space<smem>>
    %114 = vector.broadcast %113 : f32 to vector<1x100xf32>
    %115 = arith.mulf %8, %114 : vector<1x100xf32>
    %c63 = arith.constant 63 : index
    %116 = memref.load %arg0[%c63] : memref<241xf32, #tpu.memory_space<smem>>
    %117 = vector.broadcast %116 : f32 to vector<1x100xf32>
    %118 = arith.addf %115, %117 : vector<1x100xf32>
    %c26 = arith.constant 26 : index
    %119 = memref.load %arg0[%c26] : memref<241xf32, #tpu.memory_space<smem>>
    %120 = vector.broadcast %119 : f32 to vector<1x100xf32>
    %121 = arith.mulf %120, %16 : vector<1x100xf32>
    %122 = arith.addf %118, %121 : vector<1x100xf32>
    %c27 = arith.constant 27 : index
    %123 = memref.load %arg0[%c27] : memref<241xf32, #tpu.memory_space<smem>>
    %124 = vector.broadcast %123 : f32 to vector<1x100xf32>
    %125 = arith.mulf %124, %24 : vector<1x100xf32>
    %126 = arith.addf %122, %125 : vector<1x100xf32>
    %c28 = arith.constant 28 : index
    %127 = memref.load %arg0[%c28] : memref<241xf32, #tpu.memory_space<smem>>
    %128 = vector.broadcast %127 : f32 to vector<1x100xf32>
    %129 = arith.mulf %128, %32 : vector<1x100xf32>
    %130 = arith.addf %126, %129 : vector<1x100xf32>
    %c29 = arith.constant 29 : index
    %131 = memref.load %arg0[%c29] : memref<241xf32, #tpu.memory_space<smem>>
    %132 = vector.broadcast %131 : f32 to vector<1x100xf32>
    %133 = arith.mulf %132, %40 : vector<1x100xf32>
    %134 = arith.addf %130, %133 : vector<1x100xf32>
    %cst_9 = arith.constant 0.000000e+00 : f32
    %135 = vector.broadcast %cst_9 : f32 to vector<1x100xf32>
    %136 = arith.maximumf %134, %135 : vector<1x100xf32>
    %c30 = arith.constant 30 : index
    %137 = memref.load %arg0[%c30] : memref<241xf32, #tpu.memory_space<smem>>
    %138 = vector.broadcast %137 : f32 to vector<1x100xf32>
    %139 = arith.mulf %8, %138 : vector<1x100xf32>
    %c64 = arith.constant 64 : index
    %140 = memref.load %arg0[%c64] : memref<241xf32, #tpu.memory_space<smem>>
    %141 = vector.broadcast %140 : f32 to vector<1x100xf32>
    %142 = arith.addf %139, %141 : vector<1x100xf32>
    %c31 = arith.constant 31 : index
    %143 = memref.load %arg0[%c31] : memref<241xf32, #tpu.memory_space<smem>>
    %144 = vector.broadcast %143 : f32 to vector<1x100xf32>
    %145 = arith.mulf %144, %16 : vector<1x100xf32>
    %146 = arith.addf %142, %145 : vector<1x100xf32>
    %c32 = arith.constant 32 : index
    %147 = memref.load %arg0[%c32] : memref<241xf32, #tpu.memory_space<smem>>
    %148 = vector.broadcast %147 : f32 to vector<1x100xf32>
    %149 = arith.mulf %148, %24 : vector<1x100xf32>
    %150 = arith.addf %146, %149 : vector<1x100xf32>
    %c33 = arith.constant 33 : index
    %151 = memref.load %arg0[%c33] : memref<241xf32, #tpu.memory_space<smem>>
    %152 = vector.broadcast %151 : f32 to vector<1x100xf32>
    %153 = arith.mulf %152, %32 : vector<1x100xf32>
    %154 = arith.addf %150, %153 : vector<1x100xf32>
    %c34 = arith.constant 34 : index
    %155 = memref.load %arg0[%c34] : memref<241xf32, #tpu.memory_space<smem>>
    %156 = vector.broadcast %155 : f32 to vector<1x100xf32>
    %157 = arith.mulf %156, %40 : vector<1x100xf32>
    %158 = arith.addf %154, %157 : vector<1x100xf32>
    %cst_10 = arith.constant 0.000000e+00 : f32
    %159 = vector.broadcast %cst_10 : f32 to vector<1x100xf32>
    %160 = arith.maximumf %158, %159 : vector<1x100xf32>
    %c35 = arith.constant 35 : index
    %161 = memref.load %arg0[%c35] : memref<241xf32, #tpu.memory_space<smem>>
    %162 = vector.broadcast %161 : f32 to vector<1x100xf32>
    %163 = arith.mulf %8, %162 : vector<1x100xf32>
    %c65 = arith.constant 65 : index
    %164 = memref.load %arg0[%c65] : memref<241xf32, #tpu.memory_space<smem>>
    %165 = vector.broadcast %164 : f32 to vector<1x100xf32>
    %166 = arith.addf %163, %165 : vector<1x100xf32>
    %c36 = arith.constant 36 : index
    %167 = memref.load %arg0[%c36] : memref<241xf32, #tpu.memory_space<smem>>
    %168 = vector.broadcast %167 : f32 to vector<1x100xf32>
    %169 = arith.mulf %168, %16 : vector<1x100xf32>
    %170 = arith.addf %166, %169 : vector<1x100xf32>
    %c37 = arith.constant 37 : index
    %171 = memref.load %arg0[%c37] : memref<241xf32, #tpu.memory_space<smem>>
    %172 = vector.broadcast %171 : f32 to vector<1x100xf32>
    %173 = arith.mulf %172, %24 : vector<1x100xf32>
    %174 = arith.addf %170, %173 : vector<1x100xf32>
    %c38 = arith.constant 38 : index
    %175 = memref.load %arg0[%c38] : memref<241xf32, #tpu.memory_space<smem>>
    %176 = vector.broadcast %175 : f32 to vector<1x100xf32>
    %177 = arith.mulf %176, %32 : vector<1x100xf32>
    %178 = arith.addf %174, %177 : vector<1x100xf32>
    %c39 = arith.constant 39 : index
    %179 = memref.load %arg0[%c39] : memref<241xf32, #tpu.memory_space<smem>>
    %180 = vector.broadcast %179 : f32 to vector<1x100xf32>
    %181 = arith.mulf %180, %40 : vector<1x100xf32>
    %182 = arith.addf %178, %181 : vector<1x100xf32>
    %cst_11 = arith.constant 0.000000e+00 : f32
    %183 = vector.broadcast %cst_11 : f32 to vector<1x100xf32>
    %184 = arith.maximumf %182, %183 : vector<1x100xf32>
    %c40 = arith.constant 40 : index
    %185 = memref.load %arg0[%c40] : memref<241xf32, #tpu.memory_space<smem>>
    %186 = vector.broadcast %185 : f32 to vector<1x100xf32>
    %187 = arith.mulf %8, %186 : vector<1x100xf32>
    %c66 = arith.constant 66 : index
    %188 = memref.load %arg0[%c66] : memref<241xf32, #tpu.memory_space<smem>>
    %189 = vector.broadcast %188 : f32 to vector<1x100xf32>
    %190 = arith.addf %187, %189 : vector<1x100xf32>
    %c41 = arith.constant 41 : index
    %191 = memref.load %arg0[%c41] : memref<241xf32, #tpu.memory_space<smem>>
    %192 = vector.broadcast %191 : f32 to vector<1x100xf32>
    %193 = arith.mulf %192, %16 : vector<1x100xf32>
    %194 = arith.addf %190, %193 : vector<1x100xf32>
    %c42 = arith.constant 42 : index
    %195 = memref.load %arg0[%c42] : memref<241xf32, #tpu.memory_space<smem>>
    %196 = vector.broadcast %195 : f32 to vector<1x100xf32>
    %197 = arith.mulf %196, %24 : vector<1x100xf32>
    %198 = arith.addf %194, %197 : vector<1x100xf32>
    %c43 = arith.constant 43 : index
    %199 = memref.load %arg0[%c43] : memref<241xf32, #tpu.memory_space<smem>>
    %200 = vector.broadcast %199 : f32 to vector<1x100xf32>
    %201 = arith.mulf %200, %32 : vector<1x100xf32>
    %202 = arith.addf %198, %201 : vector<1x100xf32>
    %c44 = arith.constant 44 : index
    %203 = memref.load %arg0[%c44] : memref<241xf32, #tpu.memory_space<smem>>
    %204 = vector.broadcast %203 : f32 to vector<1x100xf32>
    %205 = arith.mulf %204, %40 : vector<1x100xf32>
    %206 = arith.addf %202, %205 : vector<1x100xf32>
    %cst_12 = arith.constant 0.000000e+00 : f32
    %207 = vector.broadcast %cst_12 : f32 to vector<1x100xf32>
    %208 = arith.maximumf %206, %207 : vector<1x100xf32>
    %c45 = arith.constant 45 : index
    %209 = memref.load %arg0[%c45] : memref<241xf32, #tpu.memory_space<smem>>
    %210 = vector.broadcast %209 : f32 to vector<1x100xf32>
    %211 = arith.mulf %8, %210 : vector<1x100xf32>
    %c67 = arith.constant 67 : index
    %212 = memref.load %arg0[%c67] : memref<241xf32, #tpu.memory_space<smem>>
    %213 = vector.broadcast %212 : f32 to vector<1x100xf32>
    %214 = arith.addf %211, %213 : vector<1x100xf32>
    %c46 = arith.constant 46 : index
    %215 = memref.load %arg0[%c46] : memref<241xf32, #tpu.memory_space<smem>>
    %216 = vector.broadcast %215 : f32 to vector<1x100xf32>
    %217 = arith.mulf %216, %16 : vector<1x100xf32>
    %218 = arith.addf %214, %217 : vector<1x100xf32>
    %c47 = arith.constant 47 : index
    %219 = memref.load %arg0[%c47] : memref<241xf32, #tpu.memory_space<smem>>
    %220 = vector.broadcast %219 : f32 to vector<1x100xf32>
    %221 = arith.mulf %220, %24 : vector<1x100xf32>
    %222 = arith.addf %218, %221 : vector<1x100xf32>
    %c48 = arith.constant 48 : index
    %223 = memref.load %arg0[%c48] : memref<241xf32, #tpu.memory_space<smem>>
    %224 = vector.broadcast %223 : f32 to vector<1x100xf32>
    %225 = arith.mulf %224, %32 : vector<1x100xf32>
    %226 = arith.addf %222, %225 : vector<1x100xf32>
    %c49 = arith.constant 49 : index
    %227 = memref.load %arg0[%c49] : memref<241xf32, #tpu.memory_space<smem>>
    %228 = vector.broadcast %227 : f32 to vector<1x100xf32>
    %229 = arith.mulf %228, %40 : vector<1x100xf32>
    %230 = arith.addf %226, %229 : vector<1x100xf32>
    %cst_13 = arith.constant 0.000000e+00 : f32
    %231 = vector.broadcast %cst_13 : f32 to vector<1x100xf32>
    %232 = arith.maximumf %230, %231 : vector<1x100xf32>
    %c50 = arith.constant 50 : index
    %233 = memref.load %arg0[%c50] : memref<241xf32, #tpu.memory_space<smem>>
    %234 = vector.broadcast %233 : f32 to vector<1x100xf32>
    %235 = arith.mulf %8, %234 : vector<1x100xf32>
    %c68 = arith.constant 68 : index
    %236 = memref.load %arg0[%c68] : memref<241xf32, #tpu.memory_space<smem>>
    %237 = vector.broadcast %236 : f32 to vector<1x100xf32>
    %238 = arith.addf %235, %237 : vector<1x100xf32>
    %c51 = arith.constant 51 : index
    %239 = memref.load %arg0[%c51] : memref<241xf32, #tpu.memory_space<smem>>
    %240 = vector.broadcast %239 : f32 to vector<1x100xf32>
    %241 = arith.mulf %240, %16 : vector<1x100xf32>
    %242 = arith.addf %238, %241 : vector<1x100xf32>
    %c52 = arith.constant 52 : index
    %243 = memref.load %arg0[%c52] : memref<241xf32, #tpu.memory_space<smem>>
    %244 = vector.broadcast %243 : f32 to vector<1x100xf32>
    %245 = arith.mulf %244, %24 : vector<1x100xf32>
    %246 = arith.addf %242, %245 : vector<1x100xf32>
    %c53 = arith.constant 53 : index
    %247 = memref.load %arg0[%c53] : memref<241xf32, #tpu.memory_space<smem>>
    %248 = vector.broadcast %247 : f32 to vector<1x100xf32>
    %249 = arith.mulf %248, %32 : vector<1x100xf32>
    %250 = arith.addf %246, %249 : vector<1x100xf32>
    %c54 = arith.constant 54 : index
    %251 = memref.load %arg0[%c54] : memref<241xf32, #tpu.memory_space<smem>>
    %252 = vector.broadcast %251 : f32 to vector<1x100xf32>
    %253 = arith.mulf %252, %40 : vector<1x100xf32>
    %254 = arith.addf %250, %253 : vector<1x100xf32>
    %cst_14 = arith.constant 0.000000e+00 : f32
    %255 = vector.broadcast %cst_14 : f32 to vector<1x100xf32>
    %256 = arith.maximumf %254, %255 : vector<1x100xf32>
    %c55 = arith.constant 55 : index
    %257 = memref.load %arg0[%c55] : memref<241xf32, #tpu.memory_space<smem>>
    %258 = vector.broadcast %257 : f32 to vector<1x100xf32>
    %259 = arith.mulf %8, %258 : vector<1x100xf32>
    %c69 = arith.constant 69 : index
    %260 = memref.load %arg0[%c69] : memref<241xf32, #tpu.memory_space<smem>>
    %261 = vector.broadcast %260 : f32 to vector<1x100xf32>
    %262 = arith.addf %259, %261 : vector<1x100xf32>
    %c56 = arith.constant 56 : index
    %263 = memref.load %arg0[%c56] : memref<241xf32, #tpu.memory_space<smem>>
    %264 = vector.broadcast %263 : f32 to vector<1x100xf32>
    %265 = arith.mulf %264, %16 : vector<1x100xf32>
    %266 = arith.addf %262, %265 : vector<1x100xf32>
    %c57 = arith.constant 57 : index
    %267 = memref.load %arg0[%c57] : memref<241xf32, #tpu.memory_space<smem>>
    %268 = vector.broadcast %267 : f32 to vector<1x100xf32>
    %269 = arith.mulf %268, %24 : vector<1x100xf32>
    %270 = arith.addf %266, %269 : vector<1x100xf32>
    %c58 = arith.constant 58 : index
    %271 = memref.load %arg0[%c58] : memref<241xf32, #tpu.memory_space<smem>>
    %272 = vector.broadcast %271 : f32 to vector<1x100xf32>
    %273 = arith.mulf %272, %32 : vector<1x100xf32>
    %274 = arith.addf %270, %273 : vector<1x100xf32>
    %c59 = arith.constant 59 : index
    %275 = memref.load %arg0[%c59] : memref<241xf32, #tpu.memory_space<smem>>
    %276 = vector.broadcast %275 : f32 to vector<1x100xf32>
    %277 = arith.mulf %276, %40 : vector<1x100xf32>
    %278 = arith.addf %274, %277 : vector<1x100xf32>
    %cst_15 = arith.constant 0.000000e+00 : f32
    %279 = vector.broadcast %cst_15 : f32 to vector<1x100xf32>
    %280 = arith.maximumf %278, %279 : vector<1x100xf32>
    %c70 = arith.constant 70 : index
    %281 = memref.load %arg0[%c70] : memref<241xf32, #tpu.memory_space<smem>>
    %282 = vector.broadcast %281 : f32 to vector<1x100xf32>
    %283 = arith.mulf %64, %282 : vector<1x100xf32>
    %c170 = arith.constant 170 : index
    %284 = memref.load %arg0[%c170] : memref<241xf32, #tpu.memory_space<smem>>
    %285 = vector.broadcast %284 : f32 to vector<1x100xf32>
    %286 = arith.addf %283, %285 : vector<1x100xf32>
    %c71 = arith.constant 71 : index
    %287 = memref.load %arg0[%c71] : memref<241xf32, #tpu.memory_space<smem>>
    %288 = vector.broadcast %287 : f32 to vector<1x100xf32>
    %289 = arith.mulf %288, %88 : vector<1x100xf32>
    %290 = arith.addf %286, %289 : vector<1x100xf32>
    %c72 = arith.constant 72 : index
    %291 = memref.load %arg0[%c72] : memref<241xf32, #tpu.memory_space<smem>>
    %292 = vector.broadcast %291 : f32 to vector<1x100xf32>
    %293 = arith.mulf %292, %112 : vector<1x100xf32>
    %294 = arith.addf %290, %293 : vector<1x100xf32>
    %c73 = arith.constant 73 : index
    %295 = memref.load %arg0[%c73] : memref<241xf32, #tpu.memory_space<smem>>
    %296 = vector.broadcast %295 : f32 to vector<1x100xf32>
    %297 = arith.mulf %296, %136 : vector<1x100xf32>
    %298 = arith.addf %294, %297 : vector<1x100xf32>
    %c74 = arith.constant 74 : index
    %299 = memref.load %arg0[%c74] : memref<241xf32, #tpu.memory_space<smem>>
    %300 = vector.broadcast %299 : f32 to vector<1x100xf32>
    %301 = arith.mulf %300, %160 : vector<1x100xf32>
    %302 = arith.addf %298, %301 : vector<1x100xf32>
    %c75 = arith.constant 75 : index
    %303 = memref.load %arg0[%c75] : memref<241xf32, #tpu.memory_space<smem>>
    %304 = vector.broadcast %303 : f32 to vector<1x100xf32>
    %305 = arith.mulf %304, %184 : vector<1x100xf32>
    %306 = arith.addf %302, %305 : vector<1x100xf32>
    %c76 = arith.constant 76 : index
    %307 = memref.load %arg0[%c76] : memref<241xf32, #tpu.memory_space<smem>>
    %308 = vector.broadcast %307 : f32 to vector<1x100xf32>
    %309 = arith.mulf %308, %208 : vector<1x100xf32>
    %310 = arith.addf %306, %309 : vector<1x100xf32>
    %c77 = arith.constant 77 : index
    %311 = memref.load %arg0[%c77] : memref<241xf32, #tpu.memory_space<smem>>
    %312 = vector.broadcast %311 : f32 to vector<1x100xf32>
    %313 = arith.mulf %312, %232 : vector<1x100xf32>
    %314 = arith.addf %310, %313 : vector<1x100xf32>
    %c78 = arith.constant 78 : index
    %315 = memref.load %arg0[%c78] : memref<241xf32, #tpu.memory_space<smem>>
    %316 = vector.broadcast %315 : f32 to vector<1x100xf32>
    %317 = arith.mulf %316, %256 : vector<1x100xf32>
    %318 = arith.addf %314, %317 : vector<1x100xf32>
    %c79 = arith.constant 79 : index
    %319 = memref.load %arg0[%c79] : memref<241xf32, #tpu.memory_space<smem>>
    %320 = vector.broadcast %319 : f32 to vector<1x100xf32>
    %321 = arith.mulf %320, %280 : vector<1x100xf32>
    %322 = arith.addf %318, %321 : vector<1x100xf32>
    %cst_16 = arith.constant 0.000000e+00 : f32
    %323 = vector.broadcast %cst_16 : f32 to vector<1x100xf32>
    %324 = arith.maximumf %322, %323 : vector<1x100xf32>
    %c80 = arith.constant 80 : index
    %325 = memref.load %arg0[%c80] : memref<241xf32, #tpu.memory_space<smem>>
    %326 = vector.broadcast %325 : f32 to vector<1x100xf32>
    %327 = arith.mulf %64, %326 : vector<1x100xf32>
    %c171 = arith.constant 171 : index
    %328 = memref.load %arg0[%c171] : memref<241xf32, #tpu.memory_space<smem>>
    %329 = vector.broadcast %328 : f32 to vector<1x100xf32>
    %330 = arith.addf %327, %329 : vector<1x100xf32>
    %c81 = arith.constant 81 : index
    %331 = memref.load %arg0[%c81] : memref<241xf32, #tpu.memory_space<smem>>
    %332 = vector.broadcast %331 : f32 to vector<1x100xf32>
    %333 = arith.mulf %332, %88 : vector<1x100xf32>
    %334 = arith.addf %330, %333 : vector<1x100xf32>
    %c82 = arith.constant 82 : index
    %335 = memref.load %arg0[%c82] : memref<241xf32, #tpu.memory_space<smem>>
    %336 = vector.broadcast %335 : f32 to vector<1x100xf32>
    %337 = arith.mulf %336, %112 : vector<1x100xf32>
    %338 = arith.addf %334, %337 : vector<1x100xf32>
    %c83 = arith.constant 83 : index
    %339 = memref.load %arg0[%c83] : memref<241xf32, #tpu.memory_space<smem>>
    %340 = vector.broadcast %339 : f32 to vector<1x100xf32>
    %341 = arith.mulf %340, %136 : vector<1x100xf32>
    %342 = arith.addf %338, %341 : vector<1x100xf32>
    %c84 = arith.constant 84 : index
    %343 = memref.load %arg0[%c84] : memref<241xf32, #tpu.memory_space<smem>>
    %344 = vector.broadcast %343 : f32 to vector<1x100xf32>
    %345 = arith.mulf %344, %160 : vector<1x100xf32>
    %346 = arith.addf %342, %345 : vector<1x100xf32>
    %c85 = arith.constant 85 : index
    %347 = memref.load %arg0[%c85] : memref<241xf32, #tpu.memory_space<smem>>
    %348 = vector.broadcast %347 : f32 to vector<1x100xf32>
    %349 = arith.mulf %348, %184 : vector<1x100xf32>
    %350 = arith.addf %346, %349 : vector<1x100xf32>
    %c86 = arith.constant 86 : index
    %351 = memref.load %arg0[%c86] : memref<241xf32, #tpu.memory_space<smem>>
    %352 = vector.broadcast %351 : f32 to vector<1x100xf32>
    %353 = arith.mulf %352, %208 : vector<1x100xf32>
    %354 = arith.addf %350, %353 : vector<1x100xf32>
    %c87 = arith.constant 87 : index
    %355 = memref.load %arg0[%c87] : memref<241xf32, #tpu.memory_space<smem>>
    %356 = vector.broadcast %355 : f32 to vector<1x100xf32>
    %357 = arith.mulf %356, %232 : vector<1x100xf32>
    %358 = arith.addf %354, %357 : vector<1x100xf32>
    %c88 = arith.constant 88 : index
    %359 = memref.load %arg0[%c88] : memref<241xf32, #tpu.memory_space<smem>>
    %360 = vector.broadcast %359 : f32 to vector<1x100xf32>
    %361 = arith.mulf %360, %256 : vector<1x100xf32>
    %362 = arith.addf %358, %361 : vector<1x100xf32>
    %c89 = arith.constant 89 : index
    %363 = memref.load %arg0[%c89] : memref<241xf32, #tpu.memory_space<smem>>
    %364 = vector.broadcast %363 : f32 to vector<1x100xf32>
    %365 = arith.mulf %364, %280 : vector<1x100xf32>
    %366 = arith.addf %362, %365 : vector<1x100xf32>
    %cst_17 = arith.constant 0.000000e+00 : f32
    %367 = vector.broadcast %cst_17 : f32 to vector<1x100xf32>
    %368 = arith.maximumf %366, %367 : vector<1x100xf32>
    %c90 = arith.constant 90 : index
    %369 = memref.load %arg0[%c90] : memref<241xf32, #tpu.memory_space<smem>>
    %370 = vector.broadcast %369 : f32 to vector<1x100xf32>
    %371 = arith.mulf %64, %370 : vector<1x100xf32>
    %c172 = arith.constant 172 : index
    %372 = memref.load %arg0[%c172] : memref<241xf32, #tpu.memory_space<smem>>
    %373 = vector.broadcast %372 : f32 to vector<1x100xf32>
    %374 = arith.addf %371, %373 : vector<1x100xf32>
    %c91 = arith.constant 91 : index
    %375 = memref.load %arg0[%c91] : memref<241xf32, #tpu.memory_space<smem>>
    %376 = vector.broadcast %375 : f32 to vector<1x100xf32>
    %377 = arith.mulf %376, %88 : vector<1x100xf32>
    %378 = arith.addf %374, %377 : vector<1x100xf32>
    %c92 = arith.constant 92 : index
    %379 = memref.load %arg0[%c92] : memref<241xf32, #tpu.memory_space<smem>>
    %380 = vector.broadcast %379 : f32 to vector<1x100xf32>
    %381 = arith.mulf %380, %112 : vector<1x100xf32>
    %382 = arith.addf %378, %381 : vector<1x100xf32>
    %c93 = arith.constant 93 : index
    %383 = memref.load %arg0[%c93] : memref<241xf32, #tpu.memory_space<smem>>
    %384 = vector.broadcast %383 : f32 to vector<1x100xf32>
    %385 = arith.mulf %384, %136 : vector<1x100xf32>
    %386 = arith.addf %382, %385 : vector<1x100xf32>
    %c94 = arith.constant 94 : index
    %387 = memref.load %arg0[%c94] : memref<241xf32, #tpu.memory_space<smem>>
    %388 = vector.broadcast %387 : f32 to vector<1x100xf32>
    %389 = arith.mulf %388, %160 : vector<1x100xf32>
    %390 = arith.addf %386, %389 : vector<1x100xf32>
    %c95 = arith.constant 95 : index
    %391 = memref.load %arg0[%c95] : memref<241xf32, #tpu.memory_space<smem>>
    %392 = vector.broadcast %391 : f32 to vector<1x100xf32>
    %393 = arith.mulf %392, %184 : vector<1x100xf32>
    %394 = arith.addf %390, %393 : vector<1x100xf32>
    %c96 = arith.constant 96 : index
    %395 = memref.load %arg0[%c96] : memref<241xf32, #tpu.memory_space<smem>>
    %396 = vector.broadcast %395 : f32 to vector<1x100xf32>
    %397 = arith.mulf %396, %208 : vector<1x100xf32>
    %398 = arith.addf %394, %397 : vector<1x100xf32>
    %c97 = arith.constant 97 : index
    %399 = memref.load %arg0[%c97] : memref<241xf32, #tpu.memory_space<smem>>
    %400 = vector.broadcast %399 : f32 to vector<1x100xf32>
    %401 = arith.mulf %400, %232 : vector<1x100xf32>
    %402 = arith.addf %398, %401 : vector<1x100xf32>
    %c98 = arith.constant 98 : index
    %403 = memref.load %arg0[%c98] : memref<241xf32, #tpu.memory_space<smem>>
    %404 = vector.broadcast %403 : f32 to vector<1x100xf32>
    %405 = arith.mulf %404, %256 : vector<1x100xf32>
    %406 = arith.addf %402, %405 : vector<1x100xf32>
    %c99 = arith.constant 99 : index
    %407 = memref.load %arg0[%c99] : memref<241xf32, #tpu.memory_space<smem>>
    %408 = vector.broadcast %407 : f32 to vector<1x100xf32>
    %409 = arith.mulf %408, %280 : vector<1x100xf32>
    %410 = arith.addf %406, %409 : vector<1x100xf32>
    %cst_18 = arith.constant 0.000000e+00 : f32
    %411 = vector.broadcast %cst_18 : f32 to vector<1x100xf32>
    %412 = arith.maximumf %410, %411 : vector<1x100xf32>
    %c100 = arith.constant 100 : index
    %413 = memref.load %arg0[%c100] : memref<241xf32, #tpu.memory_space<smem>>
    %414 = vector.broadcast %413 : f32 to vector<1x100xf32>
    %415 = arith.mulf %64, %414 : vector<1x100xf32>
    %c173 = arith.constant 173 : index
    %416 = memref.load %arg0[%c173] : memref<241xf32, #tpu.memory_space<smem>>
    %417 = vector.broadcast %416 : f32 to vector<1x100xf32>
    %418 = arith.addf %415, %417 : vector<1x100xf32>
    %c101 = arith.constant 101 : index
    %419 = memref.load %arg0[%c101] : memref<241xf32, #tpu.memory_space<smem>>
    %420 = vector.broadcast %419 : f32 to vector<1x100xf32>
    %421 = arith.mulf %420, %88 : vector<1x100xf32>
    %422 = arith.addf %418, %421 : vector<1x100xf32>
    %c102 = arith.constant 102 : index
    %423 = memref.load %arg0[%c102] : memref<241xf32, #tpu.memory_space<smem>>
    %424 = vector.broadcast %423 : f32 to vector<1x100xf32>
    %425 = arith.mulf %424, %112 : vector<1x100xf32>
    %426 = arith.addf %422, %425 : vector<1x100xf32>
    %c103 = arith.constant 103 : index
    %427 = memref.load %arg0[%c103] : memref<241xf32, #tpu.memory_space<smem>>
    %428 = vector.broadcast %427 : f32 to vector<1x100xf32>
    %429 = arith.mulf %428, %136 : vector<1x100xf32>
    %430 = arith.addf %426, %429 : vector<1x100xf32>
    %c104 = arith.constant 104 : index
    %431 = memref.load %arg0[%c104] : memref<241xf32, #tpu.memory_space<smem>>
    %432 = vector.broadcast %431 : f32 to vector<1x100xf32>
    %433 = arith.mulf %432, %160 : vector<1x100xf32>
    %434 = arith.addf %430, %433 : vector<1x100xf32>
    %c105 = arith.constant 105 : index
    %435 = memref.load %arg0[%c105] : memref<241xf32, #tpu.memory_space<smem>>
    %436 = vector.broadcast %435 : f32 to vector<1x100xf32>
    %437 = arith.mulf %436, %184 : vector<1x100xf32>
    %438 = arith.addf %434, %437 : vector<1x100xf32>
    %c106 = arith.constant 106 : index
    %439 = memref.load %arg0[%c106] : memref<241xf32, #tpu.memory_space<smem>>
    %440 = vector.broadcast %439 : f32 to vector<1x100xf32>
    %441 = arith.mulf %440, %208 : vector<1x100xf32>
    %442 = arith.addf %438, %441 : vector<1x100xf32>
    %c107 = arith.constant 107 : index
    %443 = memref.load %arg0[%c107] : memref<241xf32, #tpu.memory_space<smem>>
    %444 = vector.broadcast %443 : f32 to vector<1x100xf32>
    %445 = arith.mulf %444, %232 : vector<1x100xf32>
    %446 = arith.addf %442, %445 : vector<1x100xf32>
    %c108 = arith.constant 108 : index
    %447 = memref.load %arg0[%c108] : memref<241xf32, #tpu.memory_space<smem>>
    %448 = vector.broadcast %447 : f32 to vector<1x100xf32>
    %449 = arith.mulf %448, %256 : vector<1x100xf32>
    %450 = arith.addf %446, %449 : vector<1x100xf32>
    %c109 = arith.constant 109 : index
    %451 = memref.load %arg0[%c109] : memref<241xf32, #tpu.memory_space<smem>>
    %452 = vector.broadcast %451 : f32 to vector<1x100xf32>
    %453 = arith.mulf %452, %280 : vector<1x100xf32>
    %454 = arith.addf %450, %453 : vector<1x100xf32>
    %cst_19 = arith.constant 0.000000e+00 : f32
    %455 = vector.broadcast %cst_19 : f32 to vector<1x100xf32>
    %456 = arith.maximumf %454, %455 : vector<1x100xf32>
    %c110 = arith.constant 110 : index
    %457 = memref.load %arg0[%c110] : memref<241xf32, #tpu.memory_space<smem>>
    %458 = vector.broadcast %457 : f32 to vector<1x100xf32>
    %459 = arith.mulf %64, %458 : vector<1x100xf32>
    %c174 = arith.constant 174 : index
    %460 = memref.load %arg0[%c174] : memref<241xf32, #tpu.memory_space<smem>>
    %461 = vector.broadcast %460 : f32 to vector<1x100xf32>
    %462 = arith.addf %459, %461 : vector<1x100xf32>
    %c111 = arith.constant 111 : index
    %463 = memref.load %arg0[%c111] : memref<241xf32, #tpu.memory_space<smem>>
    %464 = vector.broadcast %463 : f32 to vector<1x100xf32>
    %465 = arith.mulf %464, %88 : vector<1x100xf32>
    %466 = arith.addf %462, %465 : vector<1x100xf32>
    %c112 = arith.constant 112 : index
    %467 = memref.load %arg0[%c112] : memref<241xf32, #tpu.memory_space<smem>>
    %468 = vector.broadcast %467 : f32 to vector<1x100xf32>
    %469 = arith.mulf %468, %112 : vector<1x100xf32>
    %470 = arith.addf %466, %469 : vector<1x100xf32>
    %c113 = arith.constant 113 : index
    %471 = memref.load %arg0[%c113] : memref<241xf32, #tpu.memory_space<smem>>
    %472 = vector.broadcast %471 : f32 to vector<1x100xf32>
    %473 = arith.mulf %472, %136 : vector<1x100xf32>
    %474 = arith.addf %470, %473 : vector<1x100xf32>
    %c114 = arith.constant 114 : index
    %475 = memref.load %arg0[%c114] : memref<241xf32, #tpu.memory_space<smem>>
    %476 = vector.broadcast %475 : f32 to vector<1x100xf32>
    %477 = arith.mulf %476, %160 : vector<1x100xf32>
    %478 = arith.addf %474, %477 : vector<1x100xf32>
    %c115 = arith.constant 115 : index
    %479 = memref.load %arg0[%c115] : memref<241xf32, #tpu.memory_space<smem>>
    %480 = vector.broadcast %479 : f32 to vector<1x100xf32>
    %481 = arith.mulf %480, %184 : vector<1x100xf32>
    %482 = arith.addf %478, %481 : vector<1x100xf32>
    %c116 = arith.constant 116 : index
    %483 = memref.load %arg0[%c116] : memref<241xf32, #tpu.memory_space<smem>>
    %484 = vector.broadcast %483 : f32 to vector<1x100xf32>
    %485 = arith.mulf %484, %208 : vector<1x100xf32>
    %486 = arith.addf %482, %485 : vector<1x100xf32>
    %c117 = arith.constant 117 : index
    %487 = memref.load %arg0[%c117] : memref<241xf32, #tpu.memory_space<smem>>
    %488 = vector.broadcast %487 : f32 to vector<1x100xf32>
    %489 = arith.mulf %488, %232 : vector<1x100xf32>
    %490 = arith.addf %486, %489 : vector<1x100xf32>
    %c118 = arith.constant 118 : index
    %491 = memref.load %arg0[%c118] : memref<241xf32, #tpu.memory_space<smem>>
    %492 = vector.broadcast %491 : f32 to vector<1x100xf32>
    %493 = arith.mulf %492, %256 : vector<1x100xf32>
    %494 = arith.addf %490, %493 : vector<1x100xf32>
    %c119 = arith.constant 119 : index
    %495 = memref.load %arg0[%c119] : memref<241xf32, #tpu.memory_space<smem>>
    %496 = vector.broadcast %495 : f32 to vector<1x100xf32>
    %497 = arith.mulf %496, %280 : vector<1x100xf32>
    %498 = arith.addf %494, %497 : vector<1x100xf32>
    %cst_20 = arith.constant 0.000000e+00 : f32
    %499 = vector.broadcast %cst_20 : f32 to vector<1x100xf32>
    %500 = arith.maximumf %498, %499 : vector<1x100xf32>
    %c120 = arith.constant 120 : index
    %501 = memref.load %arg0[%c120] : memref<241xf32, #tpu.memory_space<smem>>
    %502 = vector.broadcast %501 : f32 to vector<1x100xf32>
    %503 = arith.mulf %64, %502 : vector<1x100xf32>
    %c175 = arith.constant 175 : index
    %504 = memref.load %arg0[%c175] : memref<241xf32, #tpu.memory_space<smem>>
    %505 = vector.broadcast %504 : f32 to vector<1x100xf32>
    %506 = arith.addf %503, %505 : vector<1x100xf32>
    %c121 = arith.constant 121 : index
    %507 = memref.load %arg0[%c121] : memref<241xf32, #tpu.memory_space<smem>>
    %508 = vector.broadcast %507 : f32 to vector<1x100xf32>
    %509 = arith.mulf %508, %88 : vector<1x100xf32>
    %510 = arith.addf %506, %509 : vector<1x100xf32>
    %c122 = arith.constant 122 : index
    %511 = memref.load %arg0[%c122] : memref<241xf32, #tpu.memory_space<smem>>
    %512 = vector.broadcast %511 : f32 to vector<1x100xf32>
    %513 = arith.mulf %512, %112 : vector<1x100xf32>
    %514 = arith.addf %510, %513 : vector<1x100xf32>
    %c123 = arith.constant 123 : index
    %515 = memref.load %arg0[%c123] : memref<241xf32, #tpu.memory_space<smem>>
    %516 = vector.broadcast %515 : f32 to vector<1x100xf32>
    %517 = arith.mulf %516, %136 : vector<1x100xf32>
    %518 = arith.addf %514, %517 : vector<1x100xf32>
    %c124 = arith.constant 124 : index
    %519 = memref.load %arg0[%c124] : memref<241xf32, #tpu.memory_space<smem>>
    %520 = vector.broadcast %519 : f32 to vector<1x100xf32>
    %521 = arith.mulf %520, %160 : vector<1x100xf32>
    %522 = arith.addf %518, %521 : vector<1x100xf32>
    %c125 = arith.constant 125 : index
    %523 = memref.load %arg0[%c125] : memref<241xf32, #tpu.memory_space<smem>>
    %524 = vector.broadcast %523 : f32 to vector<1x100xf32>
    %525 = arith.mulf %524, %184 : vector<1x100xf32>
    %526 = arith.addf %522, %525 : vector<1x100xf32>
    %c126 = arith.constant 126 : index
    %527 = memref.load %arg0[%c126] : memref<241xf32, #tpu.memory_space<smem>>
    %528 = vector.broadcast %527 : f32 to vector<1x100xf32>
    %529 = arith.mulf %528, %208 : vector<1x100xf32>
    %530 = arith.addf %526, %529 : vector<1x100xf32>
    %c127 = arith.constant 127 : index
    %531 = memref.load %arg0[%c127] : memref<241xf32, #tpu.memory_space<smem>>
    %532 = vector.broadcast %531 : f32 to vector<1x100xf32>
    %533 = arith.mulf %532, %232 : vector<1x100xf32>
    %534 = arith.addf %530, %533 : vector<1x100xf32>
    %c128 = arith.constant 128 : index
    %535 = memref.load %arg0[%c128] : memref<241xf32, #tpu.memory_space<smem>>
    %536 = vector.broadcast %535 : f32 to vector<1x100xf32>
    %537 = arith.mulf %536, %256 : vector<1x100xf32>
    %538 = arith.addf %534, %537 : vector<1x100xf32>
    %c129 = arith.constant 129 : index
    %539 = memref.load %arg0[%c129] : memref<241xf32, #tpu.memory_space<smem>>
    %540 = vector.broadcast %539 : f32 to vector<1x100xf32>
    %541 = arith.mulf %540, %280 : vector<1x100xf32>
    %542 = arith.addf %538, %541 : vector<1x100xf32>
    %cst_21 = arith.constant 0.000000e+00 : f32
    %543 = vector.broadcast %cst_21 : f32 to vector<1x100xf32>
    %544 = arith.maximumf %542, %543 : vector<1x100xf32>
    %c130 = arith.constant 130 : index
    %545 = memref.load %arg0[%c130] : memref<241xf32, #tpu.memory_space<smem>>
    %546 = vector.broadcast %545 : f32 to vector<1x100xf32>
    %547 = arith.mulf %64, %546 : vector<1x100xf32>
    %c176 = arith.constant 176 : index
    %548 = memref.load %arg0[%c176] : memref<241xf32, #tpu.memory_space<smem>>
    %549 = vector.broadcast %548 : f32 to vector<1x100xf32>
    %550 = arith.addf %547, %549 : vector<1x100xf32>
    %c131 = arith.constant 131 : index
    %551 = memref.load %arg0[%c131] : memref<241xf32, #tpu.memory_space<smem>>
    %552 = vector.broadcast %551 : f32 to vector<1x100xf32>
    %553 = arith.mulf %552, %88 : vector<1x100xf32>
    %554 = arith.addf %550, %553 : vector<1x100xf32>
    %c132 = arith.constant 132 : index
    %555 = memref.load %arg0[%c132] : memref<241xf32, #tpu.memory_space<smem>>
    %556 = vector.broadcast %555 : f32 to vector<1x100xf32>
    %557 = arith.mulf %556, %112 : vector<1x100xf32>
    %558 = arith.addf %554, %557 : vector<1x100xf32>
    %c133 = arith.constant 133 : index
    %559 = memref.load %arg0[%c133] : memref<241xf32, #tpu.memory_space<smem>>
    %560 = vector.broadcast %559 : f32 to vector<1x100xf32>
    %561 = arith.mulf %560, %136 : vector<1x100xf32>
    %562 = arith.addf %558, %561 : vector<1x100xf32>
    %c134 = arith.constant 134 : index
    %563 = memref.load %arg0[%c134] : memref<241xf32, #tpu.memory_space<smem>>
    %564 = vector.broadcast %563 : f32 to vector<1x100xf32>
    %565 = arith.mulf %564, %160 : vector<1x100xf32>
    %566 = arith.addf %562, %565 : vector<1x100xf32>
    %c135 = arith.constant 135 : index
    %567 = memref.load %arg0[%c135] : memref<241xf32, #tpu.memory_space<smem>>
    %568 = vector.broadcast %567 : f32 to vector<1x100xf32>
    %569 = arith.mulf %568, %184 : vector<1x100xf32>
    %570 = arith.addf %566, %569 : vector<1x100xf32>
    %c136 = arith.constant 136 : index
    %571 = memref.load %arg0[%c136] : memref<241xf32, #tpu.memory_space<smem>>
    %572 = vector.broadcast %571 : f32 to vector<1x100xf32>
    %573 = arith.mulf %572, %208 : vector<1x100xf32>
    %574 = arith.addf %570, %573 : vector<1x100xf32>
    %c137 = arith.constant 137 : index
    %575 = memref.load %arg0[%c137] : memref<241xf32, #tpu.memory_space<smem>>
    %576 = vector.broadcast %575 : f32 to vector<1x100xf32>
    %577 = arith.mulf %576, %232 : vector<1x100xf32>
    %578 = arith.addf %574, %577 : vector<1x100xf32>
    %c138 = arith.constant 138 : index
    %579 = memref.load %arg0[%c138] : memref<241xf32, #tpu.memory_space<smem>>
    %580 = vector.broadcast %579 : f32 to vector<1x100xf32>
    %581 = arith.mulf %580, %256 : vector<1x100xf32>
    %582 = arith.addf %578, %581 : vector<1x100xf32>
    %c139 = arith.constant 139 : index
    %583 = memref.load %arg0[%c139] : memref<241xf32, #tpu.memory_space<smem>>
    %584 = vector.broadcast %583 : f32 to vector<1x100xf32>
    %585 = arith.mulf %584, %280 : vector<1x100xf32>
    %586 = arith.addf %582, %585 : vector<1x100xf32>
    %cst_22 = arith.constant 0.000000e+00 : f32
    %587 = vector.broadcast %cst_22 : f32 to vector<1x100xf32>
    %588 = arith.maximumf %586, %587 : vector<1x100xf32>
    %c140 = arith.constant 140 : index
    %589 = memref.load %arg0[%c140] : memref<241xf32, #tpu.memory_space<smem>>
    %590 = vector.broadcast %589 : f32 to vector<1x100xf32>
    %591 = arith.mulf %64, %590 : vector<1x100xf32>
    %c177 = arith.constant 177 : index
    %592 = memref.load %arg0[%c177] : memref<241xf32, #tpu.memory_space<smem>>
    %593 = vector.broadcast %592 : f32 to vector<1x100xf32>
    %594 = arith.addf %591, %593 : vector<1x100xf32>
    %c141 = arith.constant 141 : index
    %595 = memref.load %arg0[%c141] : memref<241xf32, #tpu.memory_space<smem>>
    %596 = vector.broadcast %595 : f32 to vector<1x100xf32>
    %597 = arith.mulf %596, %88 : vector<1x100xf32>
    %598 = arith.addf %594, %597 : vector<1x100xf32>
    %c142 = arith.constant 142 : index
    %599 = memref.load %arg0[%c142] : memref<241xf32, #tpu.memory_space<smem>>
    %600 = vector.broadcast %599 : f32 to vector<1x100xf32>
    %601 = arith.mulf %600, %112 : vector<1x100xf32>
    %602 = arith.addf %598, %601 : vector<1x100xf32>
    %c143 = arith.constant 143 : index
    %603 = memref.load %arg0[%c143] : memref<241xf32, #tpu.memory_space<smem>>
    %604 = vector.broadcast %603 : f32 to vector<1x100xf32>
    %605 = arith.mulf %604, %136 : vector<1x100xf32>
    %606 = arith.addf %602, %605 : vector<1x100xf32>
    %c144 = arith.constant 144 : index
    %607 = memref.load %arg0[%c144] : memref<241xf32, #tpu.memory_space<smem>>
    %608 = vector.broadcast %607 : f32 to vector<1x100xf32>
    %609 = arith.mulf %608, %160 : vector<1x100xf32>
    %610 = arith.addf %606, %609 : vector<1x100xf32>
    %c145 = arith.constant 145 : index
    %611 = memref.load %arg0[%c145] : memref<241xf32, #tpu.memory_space<smem>>
    %612 = vector.broadcast %611 : f32 to vector<1x100xf32>
    %613 = arith.mulf %612, %184 : vector<1x100xf32>
    %614 = arith.addf %610, %613 : vector<1x100xf32>
    %c146 = arith.constant 146 : index
    %615 = memref.load %arg0[%c146] : memref<241xf32, #tpu.memory_space<smem>>
    %616 = vector.broadcast %615 : f32 to vector<1x100xf32>
    %617 = arith.mulf %616, %208 : vector<1x100xf32>
    %618 = arith.addf %614, %617 : vector<1x100xf32>
    %c147 = arith.constant 147 : index
    %619 = memref.load %arg0[%c147] : memref<241xf32, #tpu.memory_space<smem>>
    %620 = vector.broadcast %619 : f32 to vector<1x100xf32>
    %621 = arith.mulf %620, %232 : vector<1x100xf32>
    %622 = arith.addf %618, %621 : vector<1x100xf32>
    %c148 = arith.constant 148 : index
    %623 = memref.load %arg0[%c148] : memref<241xf32, #tpu.memory_space<smem>>
    %624 = vector.broadcast %623 : f32 to vector<1x100xf32>
    %625 = arith.mulf %624, %256 : vector<1x100xf32>
    %626 = arith.addf %622, %625 : vector<1x100xf32>
    %c149 = arith.constant 149 : index
    %627 = memref.load %arg0[%c149] : memref<241xf32, #tpu.memory_space<smem>>
    %628 = vector.broadcast %627 : f32 to vector<1x100xf32>
    %629 = arith.mulf %628, %280 : vector<1x100xf32>
    %630 = arith.addf %626, %629 : vector<1x100xf32>
    %cst_23 = arith.constant 0.000000e+00 : f32
    %631 = vector.broadcast %cst_23 : f32 to vector<1x100xf32>
    %632 = arith.maximumf %630, %631 : vector<1x100xf32>
    %c150 = arith.constant 150 : index
    %633 = memref.load %arg0[%c150] : memref<241xf32, #tpu.memory_space<smem>>
    %634 = vector.broadcast %633 : f32 to vector<1x100xf32>
    %635 = arith.mulf %64, %634 : vector<1x100xf32>
    %c178 = arith.constant 178 : index
    %636 = memref.load %arg0[%c178] : memref<241xf32, #tpu.memory_space<smem>>
    %637 = vector.broadcast %636 : f32 to vector<1x100xf32>
    %638 = arith.addf %635, %637 : vector<1x100xf32>
    %c151 = arith.constant 151 : index
    %639 = memref.load %arg0[%c151] : memref<241xf32, #tpu.memory_space<smem>>
    %640 = vector.broadcast %639 : f32 to vector<1x100xf32>
    %641 = arith.mulf %640, %88 : vector<1x100xf32>
    %642 = arith.addf %638, %641 : vector<1x100xf32>
    %c152 = arith.constant 152 : index
    %643 = memref.load %arg0[%c152] : memref<241xf32, #tpu.memory_space<smem>>
    %644 = vector.broadcast %643 : f32 to vector<1x100xf32>
    %645 = arith.mulf %644, %112 : vector<1x100xf32>
    %646 = arith.addf %642, %645 : vector<1x100xf32>
    %c153 = arith.constant 153 : index
    %647 = memref.load %arg0[%c153] : memref<241xf32, #tpu.memory_space<smem>>
    %648 = vector.broadcast %647 : f32 to vector<1x100xf32>
    %649 = arith.mulf %648, %136 : vector<1x100xf32>
    %650 = arith.addf %646, %649 : vector<1x100xf32>
    %c154 = arith.constant 154 : index
    %651 = memref.load %arg0[%c154] : memref<241xf32, #tpu.memory_space<smem>>
    %652 = vector.broadcast %651 : f32 to vector<1x100xf32>
    %653 = arith.mulf %652, %160 : vector<1x100xf32>
    %654 = arith.addf %650, %653 : vector<1x100xf32>
    %c155 = arith.constant 155 : index
    %655 = memref.load %arg0[%c155] : memref<241xf32, #tpu.memory_space<smem>>
    %656 = vector.broadcast %655 : f32 to vector<1x100xf32>
    %657 = arith.mulf %656, %184 : vector<1x100xf32>
    %658 = arith.addf %654, %657 : vector<1x100xf32>
    %c156 = arith.constant 156 : index
    %659 = memref.load %arg0[%c156] : memref<241xf32, #tpu.memory_space<smem>>
    %660 = vector.broadcast %659 : f32 to vector<1x100xf32>
    %661 = arith.mulf %660, %208 : vector<1x100xf32>
    %662 = arith.addf %658, %661 : vector<1x100xf32>
    %c157 = arith.constant 157 : index
    %663 = memref.load %arg0[%c157] : memref<241xf32, #tpu.memory_space<smem>>
    %664 = vector.broadcast %663 : f32 to vector<1x100xf32>
    %665 = arith.mulf %664, %232 : vector<1x100xf32>
    %666 = arith.addf %662, %665 : vector<1x100xf32>
    %c158 = arith.constant 158 : index
    %667 = memref.load %arg0[%c158] : memref<241xf32, #tpu.memory_space<smem>>
    %668 = vector.broadcast %667 : f32 to vector<1x100xf32>
    %669 = arith.mulf %668, %256 : vector<1x100xf32>
    %670 = arith.addf %666, %669 : vector<1x100xf32>
    %c159 = arith.constant 159 : index
    %671 = memref.load %arg0[%c159] : memref<241xf32, #tpu.memory_space<smem>>
    %672 = vector.broadcast %671 : f32 to vector<1x100xf32>
    %673 = arith.mulf %672, %280 : vector<1x100xf32>
    %674 = arith.addf %670, %673 : vector<1x100xf32>
    %cst_24 = arith.constant 0.000000e+00 : f32
    %675 = vector.broadcast %cst_24 : f32 to vector<1x100xf32>
    %676 = arith.maximumf %674, %675 : vector<1x100xf32>
    %c160 = arith.constant 160 : index
    %677 = memref.load %arg0[%c160] : memref<241xf32, #tpu.memory_space<smem>>
    %678 = vector.broadcast %677 : f32 to vector<1x100xf32>
    %679 = arith.mulf %64, %678 : vector<1x100xf32>
    %c179 = arith.constant 179 : index
    %680 = memref.load %arg0[%c179] : memref<241xf32, #tpu.memory_space<smem>>
    %681 = vector.broadcast %680 : f32 to vector<1x100xf32>
    %682 = arith.addf %679, %681 : vector<1x100xf32>
    %c161 = arith.constant 161 : index
    %683 = memref.load %arg0[%c161] : memref<241xf32, #tpu.memory_space<smem>>
    %684 = vector.broadcast %683 : f32 to vector<1x100xf32>
    %685 = arith.mulf %684, %88 : vector<1x100xf32>
    %686 = arith.addf %682, %685 : vector<1x100xf32>
    %c162 = arith.constant 162 : index
    %687 = memref.load %arg0[%c162] : memref<241xf32, #tpu.memory_space<smem>>
    %688 = vector.broadcast %687 : f32 to vector<1x100xf32>
    %689 = arith.mulf %688, %112 : vector<1x100xf32>
    %690 = arith.addf %686, %689 : vector<1x100xf32>
    %c163 = arith.constant 163 : index
    %691 = memref.load %arg0[%c163] : memref<241xf32, #tpu.memory_space<smem>>
    %692 = vector.broadcast %691 : f32 to vector<1x100xf32>
    %693 = arith.mulf %692, %136 : vector<1x100xf32>
    %694 = arith.addf %690, %693 : vector<1x100xf32>
    %c164 = arith.constant 164 : index
    %695 = memref.load %arg0[%c164] : memref<241xf32, #tpu.memory_space<smem>>
    %696 = vector.broadcast %695 : f32 to vector<1x100xf32>
    %697 = arith.mulf %696, %160 : vector<1x100xf32>
    %698 = arith.addf %694, %697 : vector<1x100xf32>
    %c165 = arith.constant 165 : index
    %699 = memref.load %arg0[%c165] : memref<241xf32, #tpu.memory_space<smem>>
    %700 = vector.broadcast %699 : f32 to vector<1x100xf32>
    %701 = arith.mulf %700, %184 : vector<1x100xf32>
    %702 = arith.addf %698, %701 : vector<1x100xf32>
    %c166 = arith.constant 166 : index
    %703 = memref.load %arg0[%c166] : memref<241xf32, #tpu.memory_space<smem>>
    %704 = vector.broadcast %703 : f32 to vector<1x100xf32>
    %705 = arith.mulf %704, %208 : vector<1x100xf32>
    %706 = arith.addf %702, %705 : vector<1x100xf32>
    %c167 = arith.constant 167 : index
    %707 = memref.load %arg0[%c167] : memref<241xf32, #tpu.memory_space<smem>>
    %708 = vector.broadcast %707 : f32 to vector<1x100xf32>
    %709 = arith.mulf %708, %232 : vector<1x100xf32>
    %710 = arith.addf %706, %709 : vector<1x100xf32>
    %c168 = arith.constant 168 : index
    %711 = memref.load %arg0[%c168] : memref<241xf32, #tpu.memory_space<smem>>
    %712 = vector.broadcast %711 : f32 to vector<1x100xf32>
    %713 = arith.mulf %712, %256 : vector<1x100xf32>
    %714 = arith.addf %710, %713 : vector<1x100xf32>
    %c169 = arith.constant 169 : index
    %715 = memref.load %arg0[%c169] : memref<241xf32, #tpu.memory_space<smem>>
    %716 = vector.broadcast %715 : f32 to vector<1x100xf32>
    %717 = arith.mulf %716, %280 : vector<1x100xf32>
    %718 = arith.addf %714, %717 : vector<1x100xf32>
    %cst_25 = arith.constant 0.000000e+00 : f32
    %719 = vector.broadcast %cst_25 : f32 to vector<1x100xf32>
    %720 = arith.maximumf %718, %719 : vector<1x100xf32>
    %c180 = arith.constant 180 : index
    %721 = memref.load %arg0[%c180] : memref<241xf32, #tpu.memory_space<smem>>
    %722 = vector.broadcast %721 : f32 to vector<1x100xf32>
    %723 = arith.mulf %324, %722 : vector<1x100xf32>
    %c230 = arith.constant 230 : index
    %724 = memref.load %arg0[%c230] : memref<241xf32, #tpu.memory_space<smem>>
    %725 = vector.broadcast %724 : f32 to vector<1x100xf32>
    %726 = arith.addf %723, %725 : vector<1x100xf32>
    %c181 = arith.constant 181 : index
    %727 = memref.load %arg0[%c181] : memref<241xf32, #tpu.memory_space<smem>>
    %728 = vector.broadcast %727 : f32 to vector<1x100xf32>
    %729 = arith.mulf %728, %368 : vector<1x100xf32>
    %730 = arith.addf %726, %729 : vector<1x100xf32>
    %c182 = arith.constant 182 : index
    %731 = memref.load %arg0[%c182] : memref<241xf32, #tpu.memory_space<smem>>
    %732 = vector.broadcast %731 : f32 to vector<1x100xf32>
    %733 = arith.mulf %732, %412 : vector<1x100xf32>
    %734 = arith.addf %730, %733 : vector<1x100xf32>
    %c183 = arith.constant 183 : index
    %735 = memref.load %arg0[%c183] : memref<241xf32, #tpu.memory_space<smem>>
    %736 = vector.broadcast %735 : f32 to vector<1x100xf32>
    %737 = arith.mulf %736, %456 : vector<1x100xf32>
    %738 = arith.addf %734, %737 : vector<1x100xf32>
    %c184 = arith.constant 184 : index
    %739 = memref.load %arg0[%c184] : memref<241xf32, #tpu.memory_space<smem>>
    %740 = vector.broadcast %739 : f32 to vector<1x100xf32>
    %741 = arith.mulf %740, %500 : vector<1x100xf32>
    %742 = arith.addf %738, %741 : vector<1x100xf32>
    %c185 = arith.constant 185 : index
    %743 = memref.load %arg0[%c185] : memref<241xf32, #tpu.memory_space<smem>>
    %744 = vector.broadcast %743 : f32 to vector<1x100xf32>
    %745 = arith.mulf %744, %544 : vector<1x100xf32>
    %746 = arith.addf %742, %745 : vector<1x100xf32>
    %c186 = arith.constant 186 : index
    %747 = memref.load %arg0[%c186] : memref<241xf32, #tpu.memory_space<smem>>
    %748 = vector.broadcast %747 : f32 to vector<1x100xf32>
    %749 = arith.mulf %748, %588 : vector<1x100xf32>
    %750 = arith.addf %746, %749 : vector<1x100xf32>
    %c187 = arith.constant 187 : index
    %751 = memref.load %arg0[%c187] : memref<241xf32, #tpu.memory_space<smem>>
    %752 = vector.broadcast %751 : f32 to vector<1x100xf32>
    %753 = arith.mulf %752, %632 : vector<1x100xf32>
    %754 = arith.addf %750, %753 : vector<1x100xf32>
    %c188 = arith.constant 188 : index
    %755 = memref.load %arg0[%c188] : memref<241xf32, #tpu.memory_space<smem>>
    %756 = vector.broadcast %755 : f32 to vector<1x100xf32>
    %757 = arith.mulf %756, %676 : vector<1x100xf32>
    %758 = arith.addf %754, %757 : vector<1x100xf32>
    %c189 = arith.constant 189 : index
    %759 = memref.load %arg0[%c189] : memref<241xf32, #tpu.memory_space<smem>>
    %760 = vector.broadcast %759 : f32 to vector<1x100xf32>
    %761 = arith.mulf %760, %720 : vector<1x100xf32>
    %762 = arith.addf %758, %761 : vector<1x100xf32>
    %cst_26 = arith.constant 0.000000e+00 : f32
    %763 = vector.broadcast %cst_26 : f32 to vector<1x100xf32>
    %764 = arith.maximumf %762, %763 : vector<1x100xf32>
    %c190 = arith.constant 190 : index
    %765 = memref.load %arg0[%c190] : memref<241xf32, #tpu.memory_space<smem>>
    %766 = vector.broadcast %765 : f32 to vector<1x100xf32>
    %767 = arith.mulf %324, %766 : vector<1x100xf32>
    %c231 = arith.constant 231 : index
    %768 = memref.load %arg0[%c231] : memref<241xf32, #tpu.memory_space<smem>>
    %769 = vector.broadcast %768 : f32 to vector<1x100xf32>
    %770 = arith.addf %767, %769 : vector<1x100xf32>
    %c191 = arith.constant 191 : index
    %771 = memref.load %arg0[%c191] : memref<241xf32, #tpu.memory_space<smem>>
    %772 = vector.broadcast %771 : f32 to vector<1x100xf32>
    %773 = arith.mulf %772, %368 : vector<1x100xf32>
    %774 = arith.addf %770, %773 : vector<1x100xf32>
    %c192 = arith.constant 192 : index
    %775 = memref.load %arg0[%c192] : memref<241xf32, #tpu.memory_space<smem>>
    %776 = vector.broadcast %775 : f32 to vector<1x100xf32>
    %777 = arith.mulf %776, %412 : vector<1x100xf32>
    %778 = arith.addf %774, %777 : vector<1x100xf32>
    %c193 = arith.constant 193 : index
    %779 = memref.load %arg0[%c193] : memref<241xf32, #tpu.memory_space<smem>>
    %780 = vector.broadcast %779 : f32 to vector<1x100xf32>
    %781 = arith.mulf %780, %456 : vector<1x100xf32>
    %782 = arith.addf %778, %781 : vector<1x100xf32>
    %c194 = arith.constant 194 : index
    %783 = memref.load %arg0[%c194] : memref<241xf32, #tpu.memory_space<smem>>
    %784 = vector.broadcast %783 : f32 to vector<1x100xf32>
    %785 = arith.mulf %784, %500 : vector<1x100xf32>
    %786 = arith.addf %782, %785 : vector<1x100xf32>
    %c195 = arith.constant 195 : index
    %787 = memref.load %arg0[%c195] : memref<241xf32, #tpu.memory_space<smem>>
    %788 = vector.broadcast %787 : f32 to vector<1x100xf32>
    %789 = arith.mulf %788, %544 : vector<1x100xf32>
    %790 = arith.addf %786, %789 : vector<1x100xf32>
    %c196 = arith.constant 196 : index
    %791 = memref.load %arg0[%c196] : memref<241xf32, #tpu.memory_space<smem>>
    %792 = vector.broadcast %791 : f32 to vector<1x100xf32>
    %793 = arith.mulf %792, %588 : vector<1x100xf32>
    %794 = arith.addf %790, %793 : vector<1x100xf32>
    %c197 = arith.constant 197 : index
    %795 = memref.load %arg0[%c197] : memref<241xf32, #tpu.memory_space<smem>>
    %796 = vector.broadcast %795 : f32 to vector<1x100xf32>
    %797 = arith.mulf %796, %632 : vector<1x100xf32>
    %798 = arith.addf %794, %797 : vector<1x100xf32>
    %c198 = arith.constant 198 : index
    %799 = memref.load %arg0[%c198] : memref<241xf32, #tpu.memory_space<smem>>
    %800 = vector.broadcast %799 : f32 to vector<1x100xf32>
    %801 = arith.mulf %800, %676 : vector<1x100xf32>
    %802 = arith.addf %798, %801 : vector<1x100xf32>
    %c199 = arith.constant 199 : index
    %803 = memref.load %arg0[%c199] : memref<241xf32, #tpu.memory_space<smem>>
    %804 = vector.broadcast %803 : f32 to vector<1x100xf32>
    %805 = arith.mulf %804, %720 : vector<1x100xf32>
    %806 = arith.addf %802, %805 : vector<1x100xf32>
    %cst_27 = arith.constant 0.000000e+00 : f32
    %807 = vector.broadcast %cst_27 : f32 to vector<1x100xf32>
    %808 = arith.maximumf %806, %807 : vector<1x100xf32>
    %c200 = arith.constant 200 : index
    %809 = memref.load %arg0[%c200] : memref<241xf32, #tpu.memory_space<smem>>
    %810 = vector.broadcast %809 : f32 to vector<1x100xf32>
    %811 = arith.mulf %324, %810 : vector<1x100xf32>
    %c232 = arith.constant 232 : index
    %812 = memref.load %arg0[%c232] : memref<241xf32, #tpu.memory_space<smem>>
    %813 = vector.broadcast %812 : f32 to vector<1x100xf32>
    %814 = arith.addf %811, %813 : vector<1x100xf32>
    %c201 = arith.constant 201 : index
    %815 = memref.load %arg0[%c201] : memref<241xf32, #tpu.memory_space<smem>>
    %816 = vector.broadcast %815 : f32 to vector<1x100xf32>
    %817 = arith.mulf %816, %368 : vector<1x100xf32>
    %818 = arith.addf %814, %817 : vector<1x100xf32>
    %c202 = arith.constant 202 : index
    %819 = memref.load %arg0[%c202] : memref<241xf32, #tpu.memory_space<smem>>
    %820 = vector.broadcast %819 : f32 to vector<1x100xf32>
    %821 = arith.mulf %820, %412 : vector<1x100xf32>
    %822 = arith.addf %818, %821 : vector<1x100xf32>
    %c203 = arith.constant 203 : index
    %823 = memref.load %arg0[%c203] : memref<241xf32, #tpu.memory_space<smem>>
    %824 = vector.broadcast %823 : f32 to vector<1x100xf32>
    %825 = arith.mulf %824, %456 : vector<1x100xf32>
    %826 = arith.addf %822, %825 : vector<1x100xf32>
    %c204 = arith.constant 204 : index
    %827 = memref.load %arg0[%c204] : memref<241xf32, #tpu.memory_space<smem>>
    %828 = vector.broadcast %827 : f32 to vector<1x100xf32>
    %829 = arith.mulf %828, %500 : vector<1x100xf32>
    %830 = arith.addf %826, %829 : vector<1x100xf32>
    %c205 = arith.constant 205 : index
    %831 = memref.load %arg0[%c205] : memref<241xf32, #tpu.memory_space<smem>>
    %832 = vector.broadcast %831 : f32 to vector<1x100xf32>
    %833 = arith.mulf %832, %544 : vector<1x100xf32>
    %834 = arith.addf %830, %833 : vector<1x100xf32>
    %c206 = arith.constant 206 : index
    %835 = memref.load %arg0[%c206] : memref<241xf32, #tpu.memory_space<smem>>
    %836 = vector.broadcast %835 : f32 to vector<1x100xf32>
    %837 = arith.mulf %836, %588 : vector<1x100xf32>
    %838 = arith.addf %834, %837 : vector<1x100xf32>
    %c207 = arith.constant 207 : index
    %839 = memref.load %arg0[%c207] : memref<241xf32, #tpu.memory_space<smem>>
    %840 = vector.broadcast %839 : f32 to vector<1x100xf32>
    %841 = arith.mulf %840, %632 : vector<1x100xf32>
    %842 = arith.addf %838, %841 : vector<1x100xf32>
    %c208 = arith.constant 208 : index
    %843 = memref.load %arg0[%c208] : memref<241xf32, #tpu.memory_space<smem>>
    %844 = vector.broadcast %843 : f32 to vector<1x100xf32>
    %845 = arith.mulf %844, %676 : vector<1x100xf32>
    %846 = arith.addf %842, %845 : vector<1x100xf32>
    %c209 = arith.constant 209 : index
    %847 = memref.load %arg0[%c209] : memref<241xf32, #tpu.memory_space<smem>>
    %848 = vector.broadcast %847 : f32 to vector<1x100xf32>
    %849 = arith.mulf %848, %720 : vector<1x100xf32>
    %850 = arith.addf %846, %849 : vector<1x100xf32>
    %cst_28 = arith.constant 0.000000e+00 : f32
    %851 = vector.broadcast %cst_28 : f32 to vector<1x100xf32>
    %852 = arith.maximumf %850, %851 : vector<1x100xf32>
    %c210 = arith.constant 210 : index
    %853 = memref.load %arg0[%c210] : memref<241xf32, #tpu.memory_space<smem>>
    %854 = vector.broadcast %853 : f32 to vector<1x100xf32>
    %855 = arith.mulf %324, %854 : vector<1x100xf32>
    %c233 = arith.constant 233 : index
    %856 = memref.load %arg0[%c233] : memref<241xf32, #tpu.memory_space<smem>>
    %857 = vector.broadcast %856 : f32 to vector<1x100xf32>
    %858 = arith.addf %855, %857 : vector<1x100xf32>
    %c211 = arith.constant 211 : index
    %859 = memref.load %arg0[%c211] : memref<241xf32, #tpu.memory_space<smem>>
    %860 = vector.broadcast %859 : f32 to vector<1x100xf32>
    %861 = arith.mulf %860, %368 : vector<1x100xf32>
    %862 = arith.addf %858, %861 : vector<1x100xf32>
    %c212 = arith.constant 212 : index
    %863 = memref.load %arg0[%c212] : memref<241xf32, #tpu.memory_space<smem>>
    %864 = vector.broadcast %863 : f32 to vector<1x100xf32>
    %865 = arith.mulf %864, %412 : vector<1x100xf32>
    %866 = arith.addf %862, %865 : vector<1x100xf32>
    %c213 = arith.constant 213 : index
    %867 = memref.load %arg0[%c213] : memref<241xf32, #tpu.memory_space<smem>>
    %868 = vector.broadcast %867 : f32 to vector<1x100xf32>
    %869 = arith.mulf %868, %456 : vector<1x100xf32>
    %870 = arith.addf %866, %869 : vector<1x100xf32>
    %c214 = arith.constant 214 : index
    %871 = memref.load %arg0[%c214] : memref<241xf32, #tpu.memory_space<smem>>
    %872 = vector.broadcast %871 : f32 to vector<1x100xf32>
    %873 = arith.mulf %872, %500 : vector<1x100xf32>
    %874 = arith.addf %870, %873 : vector<1x100xf32>
    %c215 = arith.constant 215 : index
    %875 = memref.load %arg0[%c215] : memref<241xf32, #tpu.memory_space<smem>>
    %876 = vector.broadcast %875 : f32 to vector<1x100xf32>
    %877 = arith.mulf %876, %544 : vector<1x100xf32>
    %878 = arith.addf %874, %877 : vector<1x100xf32>
    %c216 = arith.constant 216 : index
    %879 = memref.load %arg0[%c216] : memref<241xf32, #tpu.memory_space<smem>>
    %880 = vector.broadcast %879 : f32 to vector<1x100xf32>
    %881 = arith.mulf %880, %588 : vector<1x100xf32>
    %882 = arith.addf %878, %881 : vector<1x100xf32>
    %c217 = arith.constant 217 : index
    %883 = memref.load %arg0[%c217] : memref<241xf32, #tpu.memory_space<smem>>
    %884 = vector.broadcast %883 : f32 to vector<1x100xf32>
    %885 = arith.mulf %884, %632 : vector<1x100xf32>
    %886 = arith.addf %882, %885 : vector<1x100xf32>
    %c218 = arith.constant 218 : index
    %887 = memref.load %arg0[%c218] : memref<241xf32, #tpu.memory_space<smem>>
    %888 = vector.broadcast %887 : f32 to vector<1x100xf32>
    %889 = arith.mulf %888, %676 : vector<1x100xf32>
    %890 = arith.addf %886, %889 : vector<1x100xf32>
    %c219 = arith.constant 219 : index
    %891 = memref.load %arg0[%c219] : memref<241xf32, #tpu.memory_space<smem>>
    %892 = vector.broadcast %891 : f32 to vector<1x100xf32>
    %893 = arith.mulf %892, %720 : vector<1x100xf32>
    %894 = arith.addf %890, %893 : vector<1x100xf32>
    %cst_29 = arith.constant 0.000000e+00 : f32
    %895 = vector.broadcast %cst_29 : f32 to vector<1x100xf32>
    %896 = arith.maximumf %894, %895 : vector<1x100xf32>
    %c220 = arith.constant 220 : index
    %897 = memref.load %arg0[%c220] : memref<241xf32, #tpu.memory_space<smem>>
    %898 = vector.broadcast %897 : f32 to vector<1x100xf32>
    %899 = arith.mulf %324, %898 : vector<1x100xf32>
    %c234 = arith.constant 234 : index
    %900 = memref.load %arg0[%c234] : memref<241xf32, #tpu.memory_space<smem>>
    %901 = vector.broadcast %900 : f32 to vector<1x100xf32>
    %902 = arith.addf %899, %901 : vector<1x100xf32>
    %c221 = arith.constant 221 : index
    %903 = memref.load %arg0[%c221] : memref<241xf32, #tpu.memory_space<smem>>
    %904 = vector.broadcast %903 : f32 to vector<1x100xf32>
    %905 = arith.mulf %904, %368 : vector<1x100xf32>
    %906 = arith.addf %902, %905 : vector<1x100xf32>
    %c222 = arith.constant 222 : index
    %907 = memref.load %arg0[%c222] : memref<241xf32, #tpu.memory_space<smem>>
    %908 = vector.broadcast %907 : f32 to vector<1x100xf32>
    %909 = arith.mulf %908, %412 : vector<1x100xf32>
    %910 = arith.addf %906, %909 : vector<1x100xf32>
    %c223 = arith.constant 223 : index
    %911 = memref.load %arg0[%c223] : memref<241xf32, #tpu.memory_space<smem>>
    %912 = vector.broadcast %911 : f32 to vector<1x100xf32>
    %913 = arith.mulf %912, %456 : vector<1x100xf32>
    %914 = arith.addf %910, %913 : vector<1x100xf32>
    %c224 = arith.constant 224 : index
    %915 = memref.load %arg0[%c224] : memref<241xf32, #tpu.memory_space<smem>>
    %916 = vector.broadcast %915 : f32 to vector<1x100xf32>
    %917 = arith.mulf %916, %500 : vector<1x100xf32>
    %918 = arith.addf %914, %917 : vector<1x100xf32>
    %c225 = arith.constant 225 : index
    %919 = memref.load %arg0[%c225] : memref<241xf32, #tpu.memory_space<smem>>
    %920 = vector.broadcast %919 : f32 to vector<1x100xf32>
    %921 = arith.mulf %920, %544 : vector<1x100xf32>
    %922 = arith.addf %918, %921 : vector<1x100xf32>
    %c226 = arith.constant 226 : index
    %923 = memref.load %arg0[%c226] : memref<241xf32, #tpu.memory_space<smem>>
    %924 = vector.broadcast %923 : f32 to vector<1x100xf32>
    %925 = arith.mulf %924, %588 : vector<1x100xf32>
    %926 = arith.addf %922, %925 : vector<1x100xf32>
    %c227 = arith.constant 227 : index
    %927 = memref.load %arg0[%c227] : memref<241xf32, #tpu.memory_space<smem>>
    %928 = vector.broadcast %927 : f32 to vector<1x100xf32>
    %929 = arith.mulf %928, %632 : vector<1x100xf32>
    %930 = arith.addf %926, %929 : vector<1x100xf32>
    %c228 = arith.constant 228 : index
    %931 = memref.load %arg0[%c228] : memref<241xf32, #tpu.memory_space<smem>>
    %932 = vector.broadcast %931 : f32 to vector<1x100xf32>
    %933 = arith.mulf %932, %676 : vector<1x100xf32>
    %934 = arith.addf %930, %933 : vector<1x100xf32>
    %c229 = arith.constant 229 : index
    %935 = memref.load %arg0[%c229] : memref<241xf32, #tpu.memory_space<smem>>
    %936 = vector.broadcast %935 : f32 to vector<1x100xf32>
    %937 = arith.mulf %936, %720 : vector<1x100xf32>
    %938 = arith.addf %934, %937 : vector<1x100xf32>
    %cst_30 = arith.constant 0.000000e+00 : f32
    %939 = vector.broadcast %cst_30 : f32 to vector<1x100xf32>
    %940 = arith.maximumf %938, %939 : vector<1x100xf32>
    %c235 = arith.constant 235 : index
    %941 = memref.load %arg0[%c235] : memref<241xf32, #tpu.memory_space<smem>>
    %942 = vector.broadcast %941 : f32 to vector<1x100xf32>
    %943 = arith.mulf %764, %942 : vector<1x100xf32>
    %c240 = arith.constant 240 : index
    %944 = memref.load %arg0[%c240] : memref<241xf32, #tpu.memory_space<smem>>
    %945 = vector.broadcast %944 : f32 to vector<1x100xf32>
    %946 = arith.addf %943, %945 : vector<1x100xf32>
    %c236 = arith.constant 236 : index
    %947 = memref.load %arg0[%c236] : memref<241xf32, #tpu.memory_space<smem>>
    %948 = vector.broadcast %947 : f32 to vector<1x100xf32>
    %949 = arith.mulf %948, %808 : vector<1x100xf32>
    %950 = arith.addf %946, %949 : vector<1x100xf32>
    %c237 = arith.constant 237 : index
    %951 = memref.load %arg0[%c237] : memref<241xf32, #tpu.memory_space<smem>>
    %952 = vector.broadcast %951 : f32 to vector<1x100xf32>
    %953 = arith.mulf %952, %852 : vector<1x100xf32>
    %954 = arith.addf %950, %953 : vector<1x100xf32>
    %c238 = arith.constant 238 : index
    %955 = memref.load %arg0[%c238] : memref<241xf32, #tpu.memory_space<smem>>
    %956 = vector.broadcast %955 : f32 to vector<1x100xf32>
    %957 = arith.mulf %956, %896 : vector<1x100xf32>
    %958 = arith.addf %954, %957 : vector<1x100xf32>
    %c239 = arith.constant 239 : index
    %959 = memref.load %arg0[%c239] : memref<241xf32, #tpu.memory_space<smem>>
    %960 = vector.broadcast %959 : f32 to vector<1x100xf32>
    %961 = arith.mulf %960, %940 : vector<1x100xf32>
    %962 = arith.addf %958, %961 : vector<1x100xf32>
    %c0_31 = arith.constant 0 : index
    %c0_32 = arith.constant 0 : index
    %963 = vector.load %arg2[%c0_31, %c0_32] : memref<1x100xf32, #tpu.memory_space<vmem>>, vector<1x100xf32>
    tpu.vector_store %arg2[%c0_31, %c0_32], %962 {strides = array<i32>} : memref<1x100xf32, #tpu.memory_space<vmem>>, vector<1x100xf32>,
    return
  }
}

</mosaic_0001>

<bundles_post_ra>
// kernel: tpu_custom_call.1
= control target key start
LH: loop header
LB: loop body
LE: loop exit
PB: predicated region body
PF: predicated region fallthrough
CT: control target
= control target key end

     0   :  { %7 = vsyncpa [#allocation4], 0  ;;  %s2247_s0 = inlined_call_operand.hbm [shape: f32[241], index: 0, kind: input, shape index: {}]   ;;  %s2248_s1 = inlined_call_operand.vmem [shape: f32[1,100], index: 1, kind: input, shape index: {}]   ;;  %s2249_s2 = inlined_call_operand.hbm [shape: f32[1,100], index: 2, kind: output, shape index: {}]  }
   0x1   :  { %8 = vsyncpa [#allocation3], 0  ;;  %s1215_s11 = scalar_lea.hbm %s2247_s0, 32 }
   0x2   :  { %p1216_p0 = scmp.ne.s32.totalorder %s2247_s0, %s1215_s11  ;;  %p1219_p1 = scmp.lt.u32.totalorder %s1215_s11, %s2247_s0 }
   0x4   :  { %p1221_p2 = pnand %p1219_p1, %p1216_p0 }
   0x6   :  { %1224 = shalt.err (!%p1221_p2)
}
   0x7   :  { %s1251_s16 = smov [#allocation2]  }
   0x8   :  { %16 = dma.hbm_to_smem %s2247_s0, 32, %s1251_s16, [#allocation4]  }
   0x9   :  { %1247 = dma.done.wait [#allocation4], 32  }
   0xa   :  { %1248 = vsyncadd [#allocation4], 4294967264 }
   0xb   :  { %22 = sfence }
   0xc   :  { %s24_s19 = sld [smem:[#allocation2]]  ;;  %s973_s20 = sld [smem:[#allocation2 + $0x5]]  ;;  %v23_v0 = vld [vmem:[%s2248_s1] sm:$0x1]  ;;  %vm956_vm0 = vcmask 811008  }
   0xd   :  { %s974_s21 = sld [smem:[#allocation2 + $0x1]]  ;;  %s975_s22 = sld [smem:[#allocation2 + $0x6]] }
   0xe   :  { %s976_s23 = sld [smem:[#allocation2 + $0x2]]  ;;  %s1280_s24 = sld [smem:[#allocation2 + $0x7]] }
   0xf   :  { %s978_s25 = sld [smem:[#allocation2 + $0x3]]  ;;  %s1282_s26 = sld [smem:[#allocation2 + $0x8]] }
  0x10   :  { %s1287_s29 = sld [smem:[#allocation2 + $0x4]]  ;;  %s1289_s0 = sld [smem:[#allocation2 + $0x9]] }
  0x11   :  { %s1291_s30 = sld [smem:[#allocation2 + $0xa]]  ;;  %s1293_s3 = sld [smem:[#allocation2 + $0x3c]] }
  0x12   :  { %v25_v1 = vstv %s24_s19  ;;  %v28_v2 = vstv %s973_s20  ;;  %s1295_s4 = sld [smem:[#allocation2 + $0xb]]  ;;  %s1297_s5 = sld [smem:[#allocation2 + $0xc]] }
  0x13   :  { %v26_v3 = vmul.f32 %v25_v1, %v23_v0  ;;  %v32_v4 = vstv %s974_s21  ;;  %v35_v5 = vstv %s975_s22  ;;  %s1299_s1 = sld [smem:[#allocation2 + $0xd]]  ;;  %s1301_s6 = sld [smem:[#allocation2 + $0xe]] }
  0x14   :  { %v33_v6 = vmul.f32 %v32_v4, %v23_v0  ;;  %v39_v7 = vstv %s976_s23  ;;  %v42_v8 = vstv %s1280_s24  ;;  %s1304_s7 = sld [smem:[#allocation2 + $0xf]]  ;;  %s1306_s8 = sld [smem:[#allocation2 + $0x3d]] }
  0x15   :  { %v29_v9 = vadd.f32 %v28_v2, %v26_v3  ;;  %v40_v10 = vmul.f32 %v39_v7, %v23_v0  ;;  %v46_v11 = vstv %s978_s25  ;;  %v49_v12 = vstv %s1282_s26  ;;  %s1309_s9 = sld [smem:[#allocation2 + $0x10]]  ;;  %s1311_s10 = sld [smem:[#allocation2 + $0x11]] }
  0x16   :  { %v36_v13 = vadd.f32 %v35_v5, %v33_v6  ;;  %v47_v14 = vmul.f32 %v46_v11, %v23_v0  ;;  %v53_v15 = vstv %s1287_s29  ;;  %v56_v16 = vstv %s1289_s0  ;;  %s1315_s11 = sld [smem:[#allocation2 + $0x12]]  ;;  %s1320_s12 = sld [smem:[#allocation2 + $0x13]] }
  0x17   :  { %v1317_v17 = vmax.f32 %v29_v9, 0.0  ;;  %v43_v18 = vadd.f32 %v42_v8, %v40_v10  ;;  %v54_v19 = vmul.f32 %v53_v15, %v23_v0  ;;  %v60_v20 = vstv %s1291_s30  ;;  %s1322_s13 = sld [smem:[#allocation2 + $0x14]]  ;;  %s1328_s14 = sld [smem:[#allocation2 + $0x3e]] }
  0x18   :  { %v1324_v21 = vmax.f32 %v36_v13, 0.0  ;;  %v50_v22 = vadd.f32 %v49_v12, %v47_v14  ;;  %v63_v23 = vstv %s1293_s3  ;;  %v66_v24 = vstv %s1295_s4  ;;  %s1330_s15 = sld [smem:[#allocation2 + $0x15]]  ;;  %s1336_s16 = sld [smem:[#allocation2 + $0x16]] }
  0x19   :  { %v1332_v25 = vmax.f32 %v43_v18, 0.0  ;;  %v57_v26 = vadd.f32 %v56_v16, %v54_v19  ;;  %v61_v27 = vmul.f32 %v60_v20, %v1317_v17  ;;  %v70_v28 = vstv %s1297_s5  ;;  %s1338_s17 = sld [smem:[#allocation2 + $0x17]]  ;;  %s1345_s18 = sld [smem:[#allocation2 + $0x18]] }
  0x1a   :  { %v1340_v29 = vmax.f32 %v50_v22, 0.0  ;;  %v67_v30 = vmul.f32 %v66_v24, %v1324_v21  ;;  %v74_v31 = vstv %s1299_s1  ;;  %v78_v32 = vstv %s1301_s6  ;;  %s1351_s19 = sld [smem:[#allocation2 + $0x19]]  ;;  %s1353_s20 = sld [smem:[#allocation2 + $0x3f]] }
  0x1b   :  { %v1347_v33 = vmax.f32 %v57_v26, 0.0  ;;  %v64_v34 = vadd.f32 %v63_v23, %v61_v27  ;;  %v71_v35 = vmul.f32 %v70_v28, %v1332_v25  ;;  %v83_v36 = vstv %s1304_s7  ;;  %s1358_s21 = sld [smem:[#allocation2 + $0x1a]]  ;;  %s1363_s22 = sld [smem:[#allocation2 + $0x1b]] }
  0x1c   :  { %v84_v37 = vmul.f32 %v83_v36, %v1317_v17  ;;  %v86_v38 = vstv %s1306_s8  ;;  %v89_v39 = vstv %s1309_s9  ;;  %v75_v41 = vmul.f32 %v74_v31, %v1340_v29  ;;  %s1365_s23 = sld [smem:[#allocation2 + $0x1c]]  ;;  %s1373_s24 = sld [smem:[#allocation2 + $0x1d]] }
  0x1d   :  { %v68_v40 = vadd.f32 %v67_v30, %v64_v34  ;;  %v90_v42 = vmul.f32 %v89_v39, %v1324_v21  ;;  %v93_v43 = vstv %s1311_s10  ;;  %v79_v44 = vmul.f32 %v78_v32, %v1347_v33  ;;  %s1375_s25 = sld [smem:[#allocation2 + $0x1e]]  ;;  %s1380_s26 = sld [smem:[#allocation2 + $0x40]] }
  0x1e   :  { %v87_v45 = vadd.f32 %v86_v38, %v84_v37  ;;  %v94_v46 = vmul.f32 %v93_v43, %v1332_v25  ;;  %v97_v47 = vstv %s1315_s11  ;;  %v101_v50 = vstv %s1320_s12  ;;  %s1385_s27 = sld [smem:[#allocation2 + $0x1f]]  ;;  %s1387_s28 = sld [smem:[#allocation2 + $0x20]] }
  0x1f   :  { %v72_v48 = vadd.f32 %v71_v35, %v68_v40  ;;  %v98_v49 = vmul.f32 %v97_v47, %v1340_v29  ;;  %v106_v51 = vstv %s1322_s13  ;;  %v109_v54 = vstv %s1328_s14  ;;  %s1394_s29 = sld [smem:[#allocation2 + $0x21]]  ;;  %s1396_s0 = sld [smem:[#allocation2 + $0x23]] }
  0x20   :  { %v91_v52 = vadd.f32 %v90_v42, %v87_v45  ;;  %v107_v53 = vmul.f32 %v106_v51, %v1317_v17  ;;  %v112_v55 = vstv %s1330_s15  ;;  %v116_v58 = vstv %s1336_s16  ;;  %s1400_s30 = sld [smem:[#allocation2 + $0x22]]  ;;  %s1405_s3 = sld [smem:[#allocation2 + $0x41]] }
  0x21   :  { %v76_v56 = vadd.f32 %v75_v41, %v72_v48  ;;  %v113_v57 = vmul.f32 %v112_v55, %v1324_v21  ;;  %v120_v59 = vstv %s1338_s17  ;;  %v102_v61 = vmul.f32 %v101_v50, %v1347_v33  ;;  %s1407_s4 = sld [smem:[#allocation2 + $0x24]]  ;;  %s1411_s5 = sld [smem:[#allocation2 + $0x25]] }
  0x22   :  { %v95_v60 = vadd.f32 %v94_v46, %v91_v52  ;;  %v110_v62 = vadd.f32 %v109_v54, %v107_v53  ;;  %v117_v63 = vmul.f32 %v116_v58, %v1332_v25  ;;  %v124_v1 = vstv %s1345_s18  ;;  %s1413_s1 = sld [smem:[#allocation2 + $0x26]]  ;;  %s1420_s6 = sld [smem:[#allocation2 + $0x27]] }
  0x23   :  { %v80_v0 = vadd.f32 %v79_v44, %v76_v56  ;;  %v129_v2 = vstv %s1351_s19  ;;  %v132_v3 = vstv %s1353_s20  ;;  %v121_v6 = vmul.f32 %v120_v59, %v1340_v29  ;;  %s1423_s7 = sld [smem:[#allocation2 + $0x28]]  ;;  %s1425_s8 = sld [smem:[#allocation2 + $0x42]] }
  0x24   :  { %v99_v4 = vadd.f32 %v98_v49, %v95_v60  ;;  %v114_v5 = vadd.f32 %v113_v57, %v110_v62  ;;  %v130_v7 = vmul.f32 %v129_v2, %v1317_v17  ;;  %v135_v8 = vstv %s1358_s21  ;;  %s1431_s9 = sld [smem:[#allocation2 + $0x29]]  ;;  %s1435_s10 = sld [smem:[#allocation2 + $0x2a]] }
  0x25   :  { %v139_v9 = vstv %s1363_s22  ;;  %v143_v10 = vstv %s1365_s23  ;;  %v125_v12 = vmul.f32 %v124_v1, %v1347_v33  ;;  %v136_v14 = vmul.f32 %v135_v8, %v1324_v21  ;;  %s1437_s11 = sld [smem:[#allocation2 + $0x2b]]  ;;  %s1446_s12 = sld [smem:[#allocation2 + $0x2c]] }
  0x26   :  { %v118_v11 = vadd.f32 %v117_v63, %v114_v5  ;;  %v133_v13 = vadd.f32 %v132_v3, %v130_v7  ;;  %v1415_v15 = vmax.f32 %v80_v0, 0.0  ;;  %v140_v16 = vmul.f32 %v139_v9, %v1332_v25  ;;  %s1448_s13 = sld [smem:[#allocation2 + $0x2d]]  ;;  %s1453_s14 = sld [smem:[#allocation2 + $0x43]] }
  0x27   :  { %v147_v18 = vstv %s1373_s24  ;;  %v152_v19 = vstv %s1375_s25  ;;  %v103_v20 = vadd.f32 %v102_v61, %v99_v4  ;;  %v144_v24 = vmul.f32 %v143_v10, %v1340_v29  ;;  %s1455_s15 = sld [smem:[#allocation2 + $0x2e]]  ;;  %s1460_s16 = sld [smem:[#allocation2 + $0x2f]] }
  0x28   :  { %v122_v22 = vadd.f32 %v121_v6, %v118_v11  ;;  %v137_v23 = vadd.f32 %v136_v14, %v133_v13  ;;  %v153_v26 = vmul.f32 %v152_v19, %v1317_v17  ;;  %v155_v27 = vstv %s1380_s26  ;;  %s1462_s17 = sld [smem:[#allocation2 + $0x30]]  ;;  %s1471_s18 = sld [smem:[#allocation2 + $0x31]] }
  0x29   :  { %v158_v28 = vstv %s1385_s27  ;;  %v162_v30 = vstv %s1387_s28  ;;  %v148_v34 = vmul.f32 %v147_v18, %v1347_v33  ;;  %v166_v38 = vstv %s1394_s29  ;;  %s1473_s19 = sld [smem:[#allocation2 + $0x32]]  ;;  %s1477_s20 = sld [smem:[#allocation2 + $0x44]] }
  0x2a   :  { %v126_v31 = vadd.f32 %v125_v12, %v122_v22  ;;  %v141_v32 = vadd.f32 %v140_v16, %v137_v23  ;;  %v159_v35 = vmul.f32 %v158_v28, %v1324_v21  ;;  %v156_v36 = vadd.f32 %v155_v27, %v153_v26  ;;  %s1484_s21 = sld [smem:[#allocation2 + $0x33]]  ;;  %s1486_s22 = sld [smem:[#allocation2 + $0x34]] }
  0x2b   :  { %v163_v37 = vmul.f32 %v162_v30, %v1332_v25  ;;  %v175_v39 = vstv %s1396_s0  ;;  %v1442_v40 = vmax.f32 %v103_v20, 0.0  ;;  %v167_v42 = vmul.f32 %v166_v38, %v1340_v29  ;;  %s1490_s23 = sld [smem:[#allocation2 + $0x35]]  ;;  %s1495_s24 = sld [smem:[#allocation2 + $0x36]] }
  0x2c   :  { %v145_v41 = vadd.f32 %v144_v24, %v141_v32  ;;  %v170_v43 = vstv %s1400_s30  ;;  %v160_v44 = vadd.f32 %v159_v35, %v156_v36  ;;  %v176_v45 = vmul.f32 %v175_v39, %v1317_v17  ;;  %s1497_s25 = sld [smem:[#allocation2 + $0x37]]  ;;  %s1505_s26 = sld [smem:[#allocation2 + $0x45]] }
  0x2d   :  { %v178_v46 = vstv %s1405_s3  ;;  %v181_v47 = vstv %s1407_s4  ;;  %v185_v50 = vstv %s1411_s5  ;;  %v189_v51 = vstv %s1413_s1  ;;  %s1507_s27 = sld [smem:[#allocation2 + $0x38]]  ;;  %s1511_s28 = sld [smem:[#allocation2 + $0x39]] }
  0x2e   :  { %v149_v48 = vadd.f32 %v148_v34, %v145_v41  ;;  %v182_v49 = vmul.f32 %v181_v47, %v1324_v21  ;;  %v1464_v52 = vmax.f32 %v126_v31, 0.0  ;;  %v164_v53 = vadd.f32 %v163_v37, %v160_v44  ;;  %s1513_s29 = sld [smem:[#allocation2 + $0x3a]]  ;;  %s1520_s0 = sld [smem:[#allocation2 + $0x3b]] }
  0x2f   :  { %v179_v54 = vadd.f32 %v178_v46, %v176_v45  ;;  %v186_v55 = vmul.f32 %v185_v50, %v1332_v25  ;;  %v171_v56 = vmul.f32 %v170_v43, %v1347_v33  ;;  %v193_v57 = vstv %s1420_s6  ;;  %s1523_s30 = sld [smem:[#allocation2 + $0x46]]  ;;  %s1525_s3 = sld [smem:[#allocation2 + $0xaa]] }
  0x30   :  { %v198_v58 = vstv %s1423_s7  ;;  %v201_v59 = vstv %s1425_s8  ;;  %v168_v60 = vadd.f32 %v167_v42, %v164_v53  ;;  %v190_v62 = vmul.f32 %v189_v51, %v1340_v29  ;;  %s1531_s4 = sld [smem:[#allocation2 + $0x47]]  ;;  %s1533_s5 = sld [smem:[#allocation2 + $0x48]] }
  0x31   :  { %v183_v61 = vadd.f32 %v182_v49, %v179_v54  ;;  %v199_v63 = vmul.f32 %v198_v58, %v1317_v17  ;;  %v1479_v0 = vmax.f32 %v149_v48, 0.0  ;;  %v204_v1 = vstv %s1431_s9  ;;  %s1538_s1 = sld [smem:[#allocation2 + $0x49]]  ;;  %s1540_s6 = sld [smem:[#allocation2 + $0x4a]] }
  0x32   :  { %v208_v2 = vstv %s1435_s10  ;;  %v212_v3 = vstv %s1437_s11  ;;  %v194_v5 = vmul.f32 %v193_v57, %v1347_v33  ;;  %v205_v7 = vmul.f32 %v204_v1, %v1324_v21  ;;  %s1548_s7 = sld [smem:[#allocation2 + $0x4b]]  ;;  %s1553_s8 = sld [smem:[#allocation2 + $0x4c]] }
  0x33   :  { %v187_v4 = vadd.f32 %v186_v55, %v183_v61  ;;  %v202_v6 = vadd.f32 %v201_v59, %v199_v63  ;;  %v172_v8 = vadd.f32 %v171_v56, %v168_v60  ;;  %v209_v9 = vmul.f32 %v208_v2, %v1332_v25  ;;  %s1559_s9 = sld [smem:[#allocation2 + $0x4d]]  ;;  %s1561_s10 = sld [smem:[#allocation2 + $0x4e]] }
  0x34   :  { %v216_v10 = vstv %s1446_s12  ;;  %v221_v11 = vstv %s1448_s13  ;;  %v213_v14 = vmul.f32 %v212_v3, %v1340_v29  ;;  %v224_v18 = vstv %s1453_s14  ;;  %s1564_s11 = sld [smem:[#allocation2 + $0x4f]]  ;;  %s1566_s12 = sld [smem:[#allocation2 + $0x50]] }
  0x35   :  { %v191_v12 = vadd.f32 %v190_v62, %v187_v4  ;;  %v206_v13 = vadd.f32 %v205_v7, %v202_v6  ;;  %v222_v16 = vmul.f32 %v221_v11, %v1317_v17  ;;  %v227_v19 = vstv %s1455_s15  ;;  %s1572_s13 = sld [smem:[#allocation2 + $0xab]]  ;;  %s1574_s14 = sld [smem:[#allocation2 + $0x51]] }
  0x36   :  { %v231_v20 = vstv %s1460_s16  ;;  %v235_v22 = vstv %s1462_s17  ;;  %v217_v24 = vmul.f32 %v216_v10, %v1347_v33  ;;  %v228_v27 = vmul.f32 %v227_v19, %v1324_v21  ;;  %s1578_s15 = sld [smem:[#allocation2 + $0x52]]  ;;  %s1584_s16 = sld [smem:[#allocation2 + $0x53]] }
  0x37   :  { %v210_v23 = vadd.f32 %v209_v9, %v206_v13  ;;  %v225_v26 = vadd.f32 %v224_v18, %v222_v16  ;;  %v1515_v28 = vmax.f32 %v172_v8, 0.0  ;;  %v232_v30 = vmul.f32 %v231_v20, %v1332_v25  ;;  %s1586_s17 = sld [smem:[#allocation2 + $0x54]] }
  0x38   :  { %v239_v31 = vstv %s1471_s18  ;;  %v244_v32 = vstv %s1473_s19  ;;  %v195_v34 = vadd.f32 %v194_v5, %v191_v12  ;;  %v236_v37 = vmul.f32 %v235_v22, %v1340_v29  ;;  %s1589_s18 = sld [smem:[#allocation2 + $0x55]]  ;;  %s1595_s19 = sld [smem:[#allocation2 + $0x56]] }
  0x39   :  { %v214_v35 = vadd.f32 %v213_v14, %v210_v23  ;;  %v229_v36 = vadd.f32 %v228_v27, %v225_v26  ;;  %v245_v38 = vmul.f32 %v244_v32, %v1317_v17  ;;  %v247_v39 = vstv %s1477_s20  ;;  %s1600_s20 = sld [smem:[#allocation2 + $0x57]] }
  0x3a   :  { %v250_v41 = vstv %s1484_s21  ;;  %v254_v42 = vstv %s1486_s22  ;;  %v240_v44 = vmul.f32 %v239_v31, %v1347_v33  ;;  %v258_v48 = vstv %s1490_s23  ;;  %s1607_s21 = sld [smem:[#allocation2 + $0x58]]  ;;  %s1609_s22 = sld [smem:[#allocation2 + $0x5a]] }
  0x3b   :  { %v233_v43 = vadd.f32 %v232_v30, %v229_v36  ;;  %v251_v45 = vmul.f32 %v250_v41, %v1324_v21  ;;  %v255_v46 = vmul.f32 %v254_v42, %v1332_v25  ;;  %v248_v47 = vadd.f32 %v247_v39, %v245_v38  ;;  %s1613_s23 = sld [smem:[#allocation2 + $0x59]] }
  0x3c   :  { %v262_v49 = vstv %s1495_s24  ;;  %v267_v50 = vstv %s1497_s25  ;;  %v1545_v51 = vmax.f32 %v195_v34, 0.0  ;;  %v218_v53 = vadd.f32 %v217_v24, %v214_v35  ;;  %s1615_s24 = sld [smem:[#allocation2 + $0xac]]  ;;  %s1621_s25 = sld [smem:[#allocation2 + $0x5b]] }
  0x3d   :  { %v237_v54 = vadd.f32 %v236_v37, %v233_v43  ;;  %v259_v55 = vmul.f32 %v258_v48, %v1340_v29  ;;  %v252_v56 = vadd.f32 %v251_v45, %v248_v47  ;;  %v268_v57 = vmul.f32 %v267_v50, %v1317_v17 }
  0x3e   :  { %v270_v58 = vstv %s1505_s26  ;;  %v273_v59 = vstv %s1507_s27  ;;  %v263_v60 = vmul.f32 %v262_v49, %v1347_v33  ;;  %v277_v62 = vstv %s1511_s28  ;;  %s1623_s26 = sld [smem:[#allocation2 + $0x5c]]  ;;  %s1629_s27 = sld [smem:[#allocation2 + $0x5d]] }
  0x3f   :  { %v274_v61 = vmul.f32 %v273_v59, %v1324_v21  ;;  %v281_v63 = vstv %s1513_s29  ;;  %v241_v1 = vadd.f32 %v240_v44, %v237_v54  ;;  %v256_v2 = vadd.f32 %v255_v46, %v252_v56  ;;  %s1635_s28 = sld [smem:[#allocation2 + $0x5e]]  ;;  %s1637_s29 = sld [smem:[#allocation2 + $0x5f]] }
  0x40   :  { %v271_v17 = vadd.f32 %v270_v58, %v268_v57  ;;  %v278_v3 = vmul.f32 %v277_v62, %v1332_v25  ;;  %v282_v21 = vmul.f32 %v281_v63, %v1340_v29  ;;  %v285_v4 = vstv %s1520_s0  ;;  %s1645_s0 = sld [smem:[#allocation2 + $0x60]] }
  0x41   :  { %v290_v5 = vstv %s1523_s30  ;;  %v293_v6 = vstv %s1525_s3  ;;  %v260_v7 = vadd.f32 %v259_v55, %v256_v2  ;;  %v286_v9 = vmul.f32 %v285_v4, %v1347_v33  ;;  %s1647_s30 = sld [smem:[#allocation2 + $0x61]]  ;;  %s1655_s3 = sld [smem:[#allocation2 + $0x64]] }
  0x42   :  { %v275_v8 = vadd.f32 %v274_v61, %v271_v17  ;;  %v291_v25 = vmul.f32 %v290_v5, %v1415_v15  ;;  %v296_v10 = vstv %s1531_s4  ;;  %v300_v11 = vstv %s1533_s5  ;;  %s1659_s4 = sld [smem:[#allocation2 + $0x62]]  ;;  %s1661_s5 = sld [smem:[#allocation2 + $0x63]] }
  0x43   :  { %v304_v12 = vstv %s1538_s1  ;;  %v308_v29 = vstv %s1540_s6  ;;  %v264_v13 = vadd.f32 %v263_v60, %v260_v7  ;;  %v297_v18 = vmul.f32 %v296_v10, %v1442_v40  ;;  %s1667_s1 = sld [smem:[#allocation2 + $0xad]] }
  0x44   :  { %v279_v14 = vadd.f32 %v278_v3, %v275_v8  ;;  %v294_v16 = vadd.f32 %v293_v6, %v291_v25  ;;  %v1591_v33 = vmax.f32 %v218_v53, 0.0  ;;  %v301_v19 = vmul.f32 %v300_v11, %v1464_v52  ;;  %s1669_s6 = sld [smem:[#allocation2 + $0x65]] }
  0x45   :  { %v312_v20 = vstv %s1548_s7  ;;  %v1597_v22 = vmax.f32 %v241_v1, 0.0  ;;  %v305_v26 = vmul.f32 %v304_v12, %v1479_v0  ;;  %v1602_v27 = vmax.f32 %v264_v13, 0.0  ;;  %s1673_s7 = sld [smem:[#allocation2 + $0x66]] }
  0x46   :  { %v283_v23 = vadd.f32 %v282_v21, %v279_v14  ;;  %v298_v24 = vadd.f32 %v297_v18, %v294_v16  ;;  %v309_v30 = vmul.f32 %v308_v29, %v1515_v28  ;;  %v313_v31 = vmul.f32 %v312_v20, %v1545_v51 }
  0x47   :  { %v316_v32 = vstv %s1553_s8  ;;  %v320_v36 = vstv %s1559_s9  ;;  %v324_v37 = vstv %s1561_s10  ;;  %v328_v38 = vstv %s1564_s11  ;;  %s1675_s8 = sld [smem:[#allocation2 + $0x67]]  ;;  %s1680_s9 = sld [smem:[#allocation2 + $0x68]] }
  0x48   :  { %v287_v34 = vadd.f32 %v286_v9, %v283_v23  ;;  %v302_v35 = vadd.f32 %v301_v19, %v298_v24  ;;  %v333_v39 = vstv %s1566_s12  ;;  %v336_v41 = vstv %s1572_s13  ;;  %s1684_s10 = sld [smem:[#allocation2 + $0x69]]  ;;  %s1686_s11 = sld [smem:[#allocation2 + $0x6a]] }
  0x49   :  { %v339_v42 = vstv %s1574_s14  ;;  %v334_v45 = vmul.f32 %v333_v39, %v1415_v15  ;;  %v317_v47 = vmul.f32 %v316_v32, %v1591_v33  ;;  %v343_v48 = vstv %s1578_s15  ;;  %s1694_s12 = sld [smem:[#allocation2 + $0x6b]]  ;;  %s1698_s13 = sld [smem:[#allocation2 + $0x6c]] }
  0x4a   :  { %v1625_v43 = vmax.f32 %v287_v34, 0.0  ;;  %v306_v44 = vadd.f32 %v305_v26, %v302_v35  ;;  %v340_v46 = vmul.f32 %v339_v42, %v1442_v40  ;;  %v347_v49 = vstv %s1584_s16  ;;  %s1700_s14 = sld [smem:[#allocation2 + $0x6d]]  ;;  %s1705_s15 = sld [smem:[#allocation2 + $0x6e]] }
  0x4b   :  { %v351_v50 = vstv %s1586_s17  ;;  %v337_v54 = vadd.f32 %v336_v41, %v334_v45  ;;  %v344_v55 = vmul.f32 %v343_v48, %v1464_v52  ;;  %v355_v56 = vstv %s1589_s18  ;;  %s1707_s16 = sld [smem:[#allocation2 + $0xae]]  ;;  %s1712_s17 = sld [smem:[#allocation2 + $0x6f]] }
  0x4c   :  { %v310_v53 = vadd.f32 %v309_v30, %v306_v44  ;;  %v321_v57 = vmul.f32 %v320_v36, %v1597_v22  ;;  %v325_v58 = vmul.f32 %v324_v37, %v1602_v27  ;;  %v329_v59 = vmul.f32 %v328_v38, %v1625_v43  ;;  %s1714_s18 = sld [smem:[#allocation2 + $0x70]] }
  0x4d   :  { %v359_v60 = vstv %s1595_s19  ;;  %v341_v62 = vadd.f32 %v340_v46, %v337_v54  ;;  %v348_v63 = vmul.f32 %v347_v49, %v1479_v0  ;;  %v352_v1 = vmul.f32 %v351_v50, %v1515_v28  ;;  %s1719_s19 = sld [smem:[#allocation2 + $0x71]] }
  0x4e   :  { %v314_v61 = vadd.f32 %v313_v31, %v310_v53  ;;  %v356_v2 = vmul.f32 %v355_v56, %v1545_v51  ;;  %v360_v17 = vmul.f32 %v359_v60, %v1591_v33  ;;  %v363_v3 = vstv %s1600_s20  ;;  %s1721_s20 = sld [smem:[#allocation2 + $0x72]] }
  0x4f   :  { %v376_v21 = vstv %s1609_s22  ;;  %v345_v5 = vadd.f32 %v344_v55, %v341_v62  ;;  %v367_v6 = vstv %s1607_s21  ;;  %v371_v7 = vstv %s1613_s23  ;;  %s1729_s21 = sld [smem:[#allocation2 + $0x73]]  ;;  %s1737_s22 = sld [smem:[#allocation2 + $0x74]] }
  0x50   :  { %v318_v4 = vadd.f32 %v317_v47, %v314_v61  ;;  %v377_v8 = vmul.f32 %v376_v21, %v1415_v15  ;;  %v379_v9 = vstv %s1615_s24  ;;  %v382_v25 = vstv %s1621_s25  ;;  %s1739_s23 = sld [smem:[#allocation2 + $0x75]]  ;;  %s1742_s24 = sld [smem:[#allocation2 + $0x76]] }
  0x51   :  { %v386_v10 = vstv %s1623_s26  ;;  %v349_v12 = vadd.f32 %v348_v63, %v345_v5  ;;  %v383_v29 = vmul.f32 %v382_v25, %v1442_v40  ;;  %v390_v16 = vstv %s1629_s27  ;;  %s1744_s25 = sld [smem:[#allocation2 + $0x77]]  ;;  %s1750_s26 = sld [smem:[#allocation2 + $0x78]] }
  0x52   :  { %v322_v11 = vadd.f32 %v321_v57, %v318_v4  ;;  %v387_v13 = vmul.f32 %v386_v10, %v1464_v52  ;;  %v380_v14 = vadd.f32 %v379_v9, %v377_v8  ;;  %v394_v18 = vstv %s1635_s28  ;;  %s1752_s27 = sld [smem:[#allocation2 + $0xaf]]  ;;  %s1756_s28 = sld [smem:[#allocation2 + $0x79]] }
  0x53   :  { %v398_v19 = vstv %s1637_s29  ;;  %v353_v23 = vadd.f32 %v352_v1, %v349_v12  ;;  %v364_v24 = vmul.f32 %v363_v3, %v1597_v22  ;;  %v368_v26 = vmul.f32 %v367_v6, %v1602_v27  ;;  %s1758_s29 = sld [smem:[#allocation2 + $0x7a]] }
  0x54   :  { %v326_v20 = vadd.f32 %v325_v58, %v322_v11  ;;  %v384_v30 = vadd.f32 %v383_v29, %v380_v14  ;;  %v391_v31 = vmul.f32 %v390_v16, %v1479_v0  ;;  %v402_v32 = vstv %s1645_s0  ;;  %s1764_s0 = sld [smem:[#allocation2 + $0x7b]] }
  0x55   :  { %v406_v34 = vstv %s1647_s30  ;;  %v357_v35 = vadd.f32 %v356_v2, %v353_v23  ;;  %v372_v36 = vmul.f32 %v371_v7, %v1625_v43  ;;  %v395_v37 = vmul.f32 %v394_v18, %v1515_v28  ;;  %s1766_s30 = sld [smem:[#allocation2 + $0x7c]] }
  0x56   :  { %v399_v38 = vmul.f32 %v398_v19, %v1545_v51  ;;  %v330_v39 = vadd.f32 %v329_v59, %v326_v20  ;;  %v388_v41 = vadd.f32 %v387_v13, %v384_v30  ;;  %v403_v42 = vmul.f32 %v402_v32, %v1591_v33 }
  0x57   :  { %v419_v44 = vstv %s1655_s3  ;;  %v361_v45 = vadd.f32 %v360_v17, %v357_v35  ;;  %v407_v46 = vmul.f32 %v406_v34, %v1597_v22  ;;  %v410_v47 = vstv %s1659_s4  ;;  %s1774_s3 = sld [smem:[#allocation2 + $0x7d]]  ;;  %s1781_s4 = sld [smem:[#allocation2 + $0x7e]] }
  0x58   :  { %v414_v48 = vstv %s1661_s5  ;;  %v392_v49 = vadd.f32 %v391_v31, %v388_v41  ;;  %v420_v50 = vmul.f32 %v419_v44, %v1415_v15  ;;  %v422_v53 = vstv %s1667_s1  ;;  %s1783_s5 = sld [smem:[#allocation2 + $0x7f]]  ;;  %s1787_s1 = sld [smem:[#allocation2 + $0x80]] }
  0x59   :  { %v425_v54 = vstv %s1669_s6  ;;  %v365_v55 = vadd.f32 %v364_v24, %v361_v45  ;;  %v429_v57 = vstv %s1673_s7  ;;  %v433_v58 = vstv %s1675_s8  ;;  %s1789_s6 = sld [smem:[#allocation2 + $0x81]]  ;;  %s1796_s7 = sld [smem:[#allocation2 + $0x82]] }
  0x5a   :  { %v426_v56 = vmul.f32 %v425_v54, %v1442_v40  ;;  %v1723_v59 = vmax.f32 %v330_v39, 0.0  ;;  %v396_v60 = vadd.f32 %v395_v37, %v392_v49  ;;  %v423_v61 = vadd.f32 %v422_v53, %v420_v50  ;;  %s1798_s8 = sld [smem:[#allocation2 + $0xb0]] }
  0x5b   :  { %v430_v62 = vmul.f32 %v429_v57, %v1464_v52  ;;  %v369_v63 = vadd.f32 %v368_v26, %v365_v55  ;;  %v437_v1 = vstv %s1680_s9  ;;  %v441_v2 = vstv %s1684_s10  ;;  %s1802_s9 = sld [smem:[#allocation2 + $0x83]]  ;;  %s1804_s10 = sld [smem:[#allocation2 + $0x84]] }
  0x5c   :  { %v445_v17 = vstv %s1686_s11  ;;  %v400_v3 = vadd.f32 %v399_v38, %v396_v60  ;;  %v411_v21 = vmul.f32 %v410_v47, %v1602_v27  ;;  %v427_v4 = vadd.f32 %v426_v56, %v423_v61  ;;  %s1810_s11 = sld [smem:[#allocation2 + $0x85]] }
  0x5d   :  { %v434_v5 = vmul.f32 %v433_v58, %v1479_v0  ;;  %v415_v6 = vmul.f32 %v414_v48, %v1625_v43  ;;  %v438_v7 = vmul.f32 %v437_v1, %v1515_v28  ;;  %v442_v8 = vmul.f32 %v441_v2, %v1545_v51 }
  0x5e   :  { %v449_v9 = vstv %s1694_s12  ;;  %v373_v25 = vadd.f32 %v372_v36, %v369_v63  ;;  %v404_v10 = vadd.f32 %v403_v42, %v400_v3  ;;  %v431_v11 = vadd.f32 %v430_v62, %v427_v4  ;;  %s1812_s12 = sld [smem:[#allocation2 + $0x86]] }
  0x5f   :  { %v446_v12 = vmul.f32 %v445_v17, %v1591_v33  ;;  %v450_v29 = vmul.f32 %v449_v9, %v1597_v22  ;;  %v453_v13 = vstv %s1698_s13  ;;  %v462_v14 = vstv %s1705_s15  ;;  %s1819_s13 = sld [smem:[#allocation2 + $0x87]]  ;;  %s1828_s15 = sld [smem:[#allocation2 + $0x89]] }
  0x60   :  { %v465_v16 = vstv %s1707_s16  ;;  %v408_v18 = vadd.f32 %v407_v46, %v404_v10  ;;  %v435_v19 = vadd.f32 %v434_v5, %v431_v11  ;;  %v457_v20 = vstv %s1700_s14  ;;  %s1826_s14 = sld [smem:[#allocation2 + $0x88]]  ;;  %s1832_s16 = sld [smem:[#allocation2 + $0x8a]] }
  0x61   :  { %v463_v23 = vmul.f32 %v462_v14, %v1415_v15  ;;  %v468_v24 = vstv %s1712_s17  ;;  %v472_v26 = vstv %s1714_s18  ;;  %v476_v30 = vstv %s1719_s19  ;;  %s1834_s17 = sld [smem:[#allocation2 + $0x8b]]  ;;  %s1841_s18 = sld [smem:[#allocation2 + $0x8c]] }
  0x62   :  { %v480_v31 = vstv %s1721_s20  ;;  %v412_v32 = vadd.f32 %v411_v21, %v408_v18  ;;  %v439_v34 = vadd.f32 %v438_v7, %v435_v19  ;;  %v469_v36 = vmul.f32 %v468_v24, %v1442_v40  ;;  %s1843_s19 = sld [smem:[#allocation2 + $0xb1]]  ;;  %s1847_s20 = sld [smem:[#allocation2 + $0x8d]] }
  0x63   :  { %v466_v35 = vadd.f32 %v465_v16, %v463_v23  ;;  %v1769_v37 = vmax.f32 %v373_v25, 0.0  ;;  %v454_v38 = vmul.f32 %v453_v13, %v1602_v27  ;;  %v473_v39 = vmul.f32 %v472_v26, %v1464_v52 }
  0x64   :  { %v484_v41 = vstv %s1729_s21  ;;  %v416_v42 = vadd.f32 %v415_v6, %v412_v32  ;;  %v443_v44 = vadd.f32 %v442_v8, %v439_v34  ;;  %v477_v46 = vmul.f32 %v476_v30, %v1479_v0  ;;  %s1849_s21 = sld [smem:[#allocation2 + $0x8e]] }
  0x65   :  { %v470_v45 = vadd.f32 %v469_v36, %v466_v35  ;;  %v458_v47 = vmul.f32 %v457_v20, %v1625_v43  ;;  %v481_v48 = vmul.f32 %v480_v31, %v1515_v28  ;;  %v485_v49 = vmul.f32 %v484_v41, %v1545_v51 }
  0x66   :  { %v488_v50 = vstv %s1737_s22  ;;  %v447_v53 = vadd.f32 %v446_v12, %v443_v44  ;;  %v492_v55 = vstv %s1739_s23  ;;  %v496_v56 = vstv %s1742_s24  ;;  %s1855_s22 = sld [smem:[#allocation2 + $0x8f]]  ;;  %s1857_s23 = sld [smem:[#allocation2 + $0x90]] }
  0x67   :  { %v474_v54 = vadd.f32 %v473_v39, %v470_v45  ;;  %v1791_v57 = vmax.f32 %v416_v42, 0.0  ;;  %v489_v58 = vmul.f32 %v488_v50, %v1591_v33  ;;  %v500_v60 = vstv %s1744_s25  ;;  %s1864_s24 = sld [smem:[#allocation2 + $0x91]]  ;;  %s1871_s25 = sld [smem:[#allocation2 + $0x92]] }
  0x68   :  { %v505_v61 = vstv %s1750_s26  ;;  %v451_v62 = vadd.f32 %v450_v29, %v447_v53  ;;  %v508_v2 = vstv %s1752_s27  ;;  %v511_v17 = vstv %s1756_s28  ;;  %s1873_s26 = sld [smem:[#allocation2 + $0x93]]  ;;  %s1877_s27 = sld [smem:[#allocation2 + $0x94]] }
  0x69   :  { %v478_v63 = vadd.f32 %v477_v46, %v474_v54  ;;  %v506_v1 = vmul.f32 %v505_v61, %v1415_v15  ;;  %v515_v3 = vstv %s1758_s29  ;;  %v519_v21 = vstv %s1764_s0  ;;  %s1879_s28 = sld [smem:[#allocation2 + $0x95]]  ;;  %s1886_s29 = sld [smem:[#allocation2 + $0x96]] }
  0x6a   :  { %v523_v4 = vstv %s1766_s30  ;;  %v455_v5 = vadd.f32 %v454_v38, %v451_v62  ;;  %v512_v8 = vmul.f32 %v511_v17, %v1442_v40  ;;  %v493_v9 = vmul.f32 %v492_v55, %v1597_v22  ;;  %s1888_s0 = sld [smem:[#allocation2 + $0xb2]]  ;;  %s1892_s30 = sld [smem:[#allocation2 + $0x97]] }
  0x6b   :  { %v482_v6 = vadd.f32 %v481_v48, %v478_v63  ;;  %v509_v7 = vadd.f32 %v508_v2, %v506_v1  ;;  %v497_v25 = vmul.f32 %v496_v56, %v1602_v27  ;;  %v516_v10 = vmul.f32 %v515_v3, %v1464_v52 }
  0x6c   :  { %v527_v11 = vstv %s1774_s3  ;;  %v459_v12 = vadd.f32 %v458_v47, %v455_v5  ;;  %v520_v14 = vmul.f32 %v519_v21, %v1479_v0  ;;  %v501_v16 = vmul.f32 %v500_v60, %v1625_v43  ;;  %s1894_s3 = sld [smem:[#allocation2 + $0x98]] }
  0x6d   :  { %v486_v29 = vadd.f32 %v485_v49, %v482_v6  ;;  %v513_v13 = vadd.f32 %v512_v8, %v509_v7  ;;  %v524_v18 = vmul.f32 %v523_v4, %v1515_v28  ;;  %v528_v19 = vmul.f32 %v527_v11, %v1545_v51 }
  0x6e   :  { %v531_v20 = vstv %s1781_s4  ;;  %v535_v26 = vstv %s1783_s5  ;;  %v539_v30 = vstv %s1787_s1  ;;  %v1836_v31 = vmax.f32 %v459_v12, 0.0  ;;  %s1900_s4 = sld [smem:[#allocation2 + $0x99]]  ;;  %s1902_s5 = sld [smem:[#allocation2 + $0x9a]] }
  0x6f   :  { %v490_v23 = vadd.f32 %v489_v58, %v486_v29  ;;  %v517_v24 = vadd.f32 %v516_v10, %v513_v13  ;;  %v532_v32 = vmul.f32 %v531_v20, %v1591_v33  ;;  %v543_v34 = vstv %s1789_s6  ;;  %s1909_s1 = sld [smem:[#allocation2 + $0x9b]]  ;;  %s1916_s6 = sld [smem:[#allocation2 + $0x9c]] }
  0x70   :  { %v548_v35 = vstv %s1796_s7  ;;  %v551_v41 = vstv %s1798_s8  ;;  %v554_v42 = vstv %s1802_s9  ;;  %v558_v44 = vstv %s1804_s10  ;;  %s1918_s7 = sld [smem:[#allocation2 + $0x9d]]  ;;  %s1922_s8 = sld [smem:[#allocation2 + $0x9e]] }
  0x71   :  { %v494_v36 = vadd.f32 %v493_v9, %v490_v23  ;;  %v521_v38 = vadd.f32 %v520_v14, %v517_v24  ;;  %v549_v39 = vmul.f32 %v548_v35, %v1415_v15  ;;  %v562_v45 = vstv %s1810_s11  ;;  %s1924_s9 = sld [smem:[#allocation2 + $0x9f]]  ;;  %s1931_s10 = sld [smem:[#allocation2 + $0xa0]] }
  0x72   :  { %v566_v46 = vstv %s1812_s12  ;;  %v555_v50 = vmul.f32 %v554_v42, %v1442_v40  ;;  %v536_v53 = vmul.f32 %v535_v26, %v1597_v22  ;;  %v540_v54 = vmul.f32 %v539_v30, %v1602_v27  ;;  %s1933_s11 = sld [smem:[#allocation2 + $0xb3]]  ;;  %s1937_s12 = sld [smem:[#allocation2 + $0xa1]] }
  0x73   :  { %v498_v47 = vadd.f32 %v497_v25, %v494_v36  ;;  %v525_v48 = vadd.f32 %v524_v18, %v521_v38  ;;  %v552_v49 = vadd.f32 %v551_v41, %v549_v39  ;;  %v559_v55 = vmul.f32 %v558_v44, %v1464_v52 }
  0x74   :  { %v570_v56 = vstv %s1819_s13  ;;  %v563_v62 = vmul.f32 %v562_v45, %v1479_v0  ;;  %v544_v63 = vmul.f32 %v543_v34, %v1625_v43  ;;  %v567_v1 = vmul.f32 %v566_v46, %v1515_v28  ;;  %s1939_s13 = sld [smem:[#allocation2 + $0xa2]] }
  0x75   :  { %v502_v58 = vadd.f32 %v501_v16, %v498_v47  ;;  %v529_v60 = vadd.f32 %v528_v19, %v525_v48  ;;  %v556_v61 = vadd.f32 %v555_v50, %v552_v49  ;;  %v571_v2 = vmul.f32 %v570_v56, %v1545_v51 }
  0x76   :  { %v574_v17 = vstv %s1826_s14  ;;  %v578_v4 = vstv %s1828_s15  ;;  %v582_v5 = vstv %s1832_s16  ;;  %v586_v8 = vstv %s1834_s17  ;;  %s1945_s14 = sld [smem:[#allocation2 + $0xa3]]  ;;  %s1947_s15 = sld [smem:[#allocation2 + $0xa4]] }
  0x77   :  { %v533_v3 = vadd.f32 %v532_v32, %v529_v60  ;;  %v560_v21 = vadd.f32 %v559_v55, %v556_v61  ;;  %v1881_v6 = vmax.f32 %v502_v58, 0.0  ;;  %v575_v7 = vmul.f32 %v574_v17, %v1591_v33  ;;  %s1954_s16 = sld [smem:[#allocation2 + $0xa5]]  ;;  %s1961_s17 = sld [smem:[#allocation2 + $0xa6]] }
  0x78   :  { %v591_v9 = vstv %s1841_s18  ;;  %v594_v12 = vstv %s1843_s19  ;;  %v597_v29 = vstv %s1847_s20  ;;  %v601_v13 = vstv %s1849_s21  ;;  %s1963_s18 = sld [smem:[#allocation2 + $0xa7]]  ;;  %s1967_s19 = sld [smem:[#allocation2 + $0xa8]] }
  0x79   :  { %v537_v25 = vadd.f32 %v536_v53, %v533_v3  ;;  %v564_v10 = vadd.f32 %v563_v62, %v560_v21  ;;  %v592_v11 = vmul.f32 %v591_v9, %v1415_v15  ;;  %v605_v14 = vstv %s1855_s22  ;;  %s1969_s20 = sld [smem:[#allocation2 + $0xa9]]  ;;  %s1976_s21 = sld [smem:[#allocation2 + $0xb4]] }
  0x7a   :  { %v609_v16 = vstv %s1857_s23  ;;  %v598_v23 = vmul.f32 %v597_v29, %v1442_v40  ;;  %v579_v24 = vmul.f32 %v578_v4, %v1597_v22  ;;  %v583_v26 = vmul.f32 %v582_v5, %v1602_v27  ;;  %s1978_s22 = sld [smem:[#allocation2 + $0xe6]]  ;;  %s1982_s23 = sld [smem:[#allocation2 + $0xb5]] }
  0x7b   :  { %v541_v18 = vadd.f32 %v540_v54, %v537_v25  ;;  %v568_v19 = vadd.f32 %v567_v1, %v564_v10  ;;  %v595_v20 = vadd.f32 %v594_v12, %v592_v11  ;;  %v602_v30 = vmul.f32 %v601_v13, %v1464_v52 }
  0x7c   :  { %v613_v32 = vstv %s1864_s24  ;;  %v606_v38 = vmul.f32 %v605_v14, %v1479_v0  ;;  %v587_v39 = vmul.f32 %v586_v8, %v1625_v43  ;;  %v610_v41 = vmul.f32 %v609_v16, %v1515_v28  ;;  %s1984_s24 = sld [smem:[#allocation2 + $0xb6]] }
  0x7d   :  { %v545_v34 = vadd.f32 %v544_v63, %v541_v18  ;;  %v572_v35 = vadd.f32 %v571_v2, %v568_v19  ;;  %v599_v36 = vadd.f32 %v598_v23, %v595_v20  ;;  %v614_v42 = vmul.f32 %v613_v32, %v1545_v51 }
  0x7e   :  { %v617_v44 = vstv %s1871_s25  ;;  %v621_v47 = vstv %s1873_s26  ;;  %v625_v48 = vstv %s1877_s27  ;;  %v629_v53 = vstv %s1879_s28  ;;  %s1990_s25 = sld [smem:[#allocation2 + $0xb7]]  ;;  %s1992_s26 = sld [smem:[#allocation2 + $0xb8]] }
  0x7f   :  { %v576_v45 = vadd.f32 %v575_v7, %v572_v35  ;;  %v603_v46 = vadd.f32 %v602_v30, %v599_v36  ;;  %v1926_v49 = vmax.f32 %v545_v34, 0.0  ;;  %v618_v50 = vmul.f32 %v617_v44, %v1591_v33  ;;  %s1999_s27 = sld [smem:[#allocation2 + $0xb9]]  ;;  %s2006_s28 = sld [smem:[#allocation2 + $0xba]] }
  0x80   :  { %v634_v54 = vstv %s1886_s29  ;;  %v637_v60 = vstv %s1888_s0  ;;  %v640_v61 = vstv %s1892_s30  ;;  %v644_v62 = vstv %s1894_s3  ;;  %s2008_s29 = sld [smem:[#allocation2 + $0xbb]]  ;;  %s2012_s0 = sld [smem:[#allocation2 + $0xbc]] }
  0x81   :  { %v580_v55 = vadd.f32 %v579_v24, %v576_v45  ;;  %v607_v56 = vadd.f32 %v606_v38, %v603_v46  ;;  %v635_v58 = vmul.f32 %v634_v54, %v1415_v15  ;;  %v648_v63 = vstv %s1900_s4  ;;  %s2014_s30 = sld [smem:[#allocation2 + $0xbe]]  ;;  %s2021_s3 = sld [smem:[#allocation2 + $0xe7]] }
  0x82   :  { %v652_v1 = vstv %s1902_s5  ;;  %v641_v21 = vmul.f32 %v640_v61, %v1442_v40  ;;  %v622_v4 = vmul.f32 %v621_v47, %v1597_v22  ;;  %v626_v5 = vmul.f32 %v625_v48, %v1602_v27  ;;  %s2023_s4 = sld [smem:[#allocation2 + $0xbf]]  ;;  %s2027_s5 = sld [smem:[#allocation2 + $0xc0]] }
  0x83   :  { %v584_v2 = vadd.f32 %v583_v26, %v580_v55  ;;  %v611_v17 = vadd.f32 %v610_v41, %v607_v56  ;;  %v638_v3 = vadd.f32 %v637_v60, %v635_v58  ;;  %v645_v7 = vmul.f32 %v644_v62, %v1464_v52 }
  0x84   :  { %v656_v8 = vstv %s1909_s1  ;;  %v649_v11 = vmul.f32 %v648_v63, %v1479_v0  ;;  %v630_v12 = vmul.f32 %v629_v53, %v1625_v43  ;;  %v653_v29 = vmul.f32 %v652_v1, %v1515_v28  ;;  %s2033_s1 = sld [smem:[#allocation2 + $0xc1]] }
  0x85   :  { %v588_v9 = vadd.f32 %v587_v39, %v584_v2  ;;  %v615_v25 = vadd.f32 %v614_v42, %v611_v17  ;;  %v642_v10 = vadd.f32 %v641_v21, %v638_v3  ;;  %v657_v13 = vmul.f32 %v656_v8, %v1545_v51 }
  0x86   :  { %v660_v14 = vstv %s1916_s6  ;;  %v664_v19 = vstv %s1918_s7  ;;  %v668_v20 = vstv %s1922_s8  ;;  %v672_v26 = vstv %s1924_s9  ;;  %s2035_s6 = sld [smem:[#allocation2 + $0xc2]]  ;;  %s2042_s7 = sld [smem:[#allocation2 + $0xc3]] }
  0x87   :  { %v619_v16 = vadd.f32 %v618_v50, %v615_v25  ;;  %v646_v18 = vadd.f32 %v645_v7, %v642_v10  ;;  %v1971_v23 = vmax.f32 %v588_v9, 0.0  ;;  %v661_v24 = vmul.f32 %v660_v14, %v1591_v33  ;;  %s2045_s8 = sld [smem:[#allocation2 + $0xc4]]  ;;  %s2051_s9 = sld [smem:[#allocation2 + $0xbd]] }
  0x88   :  { %v677_v30 = vstv %s1931_s10  ;;  %v680_v36 = vstv %s1933_s11  ;;  %v683_v38 = vstv %s1937_s12  ;;  %v687_v39 = vstv %s1939_s13  ;;  %s2055_s10 = sld [smem:[#allocation2 + $0xc5]]  ;;  %s2062_s11 = sld [smem:[#allocation2 + $0xc8]] }
  0x89   :  { %v623_v32 = vadd.f32 %v622_v4, %v619_v16  ;;  %v650_v34 = vadd.f32 %v649_v11, %v646_v18  ;;  %v678_v35 = vmul.f32 %v677_v30, %v1415_v15  ;;  %v691_v41 = vstv %s1945_s14  ;;  %s2064_s12 = sld [smem:[#allocation2 + $0xc9]]  ;;  %s2068_s13 = sld [smem:[#allocation2 + $0xc6]] }
  0x8a   :  { %v695_v42 = vstv %s1947_s15  ;;  %v684_v15 = vmul.f32 %v683_v38, %v1442_v40  ;;  %v665_v47 = vmul.f32 %v664_v19, %v1597_v22  ;;  %v669_v48 = vmul.f32 %v668_v20, %v1602_v27  ;;  %s2070_s14 = sld [smem:[#allocation2 + $0xe8]]  ;;  %s2076_s15 = sld [smem:[#allocation2 + $0xc7]] }
  0x8b   :  { %v627_v44 = vadd.f32 %v626_v5, %v623_v32  ;;  %v654_v45 = vadd.f32 %v653_v29, %v650_v34  ;;  %v681_v46 = vadd.f32 %v680_v36, %v678_v35  ;;  %v688_v50 = vmul.f32 %v687_v39, %v1464_v52 }
  0x8c   :  { %v699_v53 = vstv %s1954_s16  ;;  %v692_v58 = vmul.f32 %v691_v41, %v1479_v0  ;;  %v673_v40 = vmul.f32 %v672_v26, %v1625_v43  ;;  %v696_v60 = vmul.f32 %v695_v42, %v1515_v28  ;;  %s2078_s16 = sld [smem:[#allocation2 + $0xca]] }
  0x8d   :  { %v631_v54 = vadd.f32 %v630_v12, %v627_v44  ;;  %v658_v55 = vadd.f32 %v657_v13, %v654_v45  ;;  %v685_v56 = vadd.f32 %v684_v15, %v681_v46  ;;  %v700_v61 = vmul.f32 %v699_v53, %v1545_v51 }
  0x8e   :  { %v703_v62 = vstv %s1961_s17  ;;  %v707_v1 = vstv %s1963_s18  ;;  %v711_v2 = vstv %s1967_s19  ;;  %v715_v51 = vstv %s1969_s20  ;;  %s2081_s17 = sld [smem:[#allocation2 + $0xcb]]  ;;  %s2086_s18 = sld [smem:[#allocation2 + $0xcc]] }
  0x8f   :  { %v662_v52 = vadd.f32 %v661_v24, %v658_v55  ;;  %v689_v63 = vadd.f32 %v688_v50, %v685_v56  ;;  %v2016_v0 = vmax.f32 %v631_v54, 0.0  ;;  %v704_v28 = vmul.f32 %v703_v62, %v1591_v33  ;;  %s2088_s19 = sld [smem:[#allocation2 + $0xcd]]  ;;  %s2094_s20 = sld [smem:[#allocation2 + $0xce]] }
  0x90   :  { %v720_v17 = vstv %s1976_s21  ;;  %v723_v5 = vstv %s1978_s22  ;;  %v726_v7 = vstv %s1982_s23  ;;  %v730_v8 = vstv %s1984_s24  ;;  %s2099_s21 = sld [smem:[#allocation2 + $0xcf]]  ;;  %s2105_s22 = sld [smem:[#allocation2 + $0xd2]] }
  0x91   :  { %v666_v3 = vadd.f32 %v665_v47, %v662_v52  ;;  %v693_v21 = vadd.f32 %v692_v58, %v689_v63  ;;  %v721_v4 = vmul.f32 %v720_v17, %v1723_v59  ;;  %v734_v9 = vstv %s1990_s25  ;;  %s2107_s23 = sld [smem:[#allocation2 + $0xe9]]  ;;  %s2111_s24 = sld [smem:[#allocation2 + $0xd0]] }
  0x92   :  { %v738_v25 = vstv %s1992_s26  ;;  %v727_v12 = vmul.f32 %v726_v7, %v1769_v37  ;;  %v708_v29 = vmul.f32 %v707_v1, %v1597_v22  ;;  %v712_v13 = vmul.f32 %v711_v2, %v1602_v27  ;;  %s2113_s25 = sld [smem:[#allocation2 + $0xd3]]  ;;  %s2119_s26 = sld [smem:[#allocation2 + $0xd4]] }
  0x93   :  { %v670_v33 = vadd.f32 %v669_v48, %v666_v3  ;;  %v697_v10 = vadd.f32 %v696_v60, %v693_v21  ;;  %v724_v11 = vadd.f32 %v723_v5, %v721_v4  ;;  %v731_v14 = vmul.f32 %v730_v8, %v1791_v57 }
  0x94   :  { %v742_v16 = vstv %s1999_s27  ;;  %v735_v24 = vmul.f32 %v734_v9, %v1836_v31  ;;  %v716_v22 = vmul.f32 %v715_v51, %v1625_v43  ;;  %v739_v27 = vmul.f32 %v738_v25, %v1881_v6  ;;  %s2121_s27 = sld [smem:[#allocation2 + $0xd5]] }
  0x95   :  { %v674_v18 = vadd.f32 %v673_v40, %v670_v33  ;;  %v701_v19 = vadd.f32 %v700_v61, %v697_v10  ;;  %v728_v20 = vadd.f32 %v727_v12, %v724_v11  ;;  %v743_v26 = vmul.f32 %v742_v16, %v1926_v49 }
  0x96   :  { %v746_v30 = vstv %s2006_s28  ;;  %v750_v35 = vstv %s2008_s29  ;;  %v754_v36 = vstv %s2012_s0  ;;  %v763_v39 = vstv %s2014_s30  ;;  %s2125_s28 = sld [smem:[#allocation2 + $0xd1]]  ;;  %s2130_s29 = sld [smem:[#allocation2 + $0xd6]] }
  0x97   :  { %v705_v32 = vadd.f32 %v704_v28, %v701_v19  ;;  %v732_v34 = vadd.f32 %v731_v14, %v728_v20  ;;  %v2057_v38 = vmax.f32 %v674_v18, 0.0  ;;  %v766_v43 = vstv %s2021_s3  ;;  %s2132_s0 = sld [smem:[#allocation2 + $0xd7]]  ;;  %s2136_s30 = sld [smem:[#allocation2 + $0xd8]] }
  0x98   :  { %v769_v41 = vstv %s2023_s4  ;;  %v747_v45 = vmul.f32 %v746_v30, %v1971_v23  ;;  %v764_v46 = vmul.f32 %v763_v39, %v1723_v59  ;;  %v773_v47 = vstv %s2027_s5  ;;  %s2148_s3 = sld [smem:[#allocation2 + $0xdc]]  ;;  %s2150_s4 = sld [smem:[#allocation2 + $0xea]] }
  0x99   :  { %v709_v42 = vadd.f32 %v708_v29, %v705_v32  ;;  %v736_v44 = vadd.f32 %v735_v24, %v732_v34  ;;  %v770_v15 = vmul.f32 %v769_v41, %v1769_v37  ;;  %v777_v48 = vstv %s2033_s1  ;;  %s2155_s5 = sld [smem:[#allocation2 + $0xd9]]  ;;  %s2157_s1 = sld [smem:[#allocation2 + $0xdd]] }
  0x9a   :  { %v781_v50 = vstv %s2035_s6  ;;  %v767_v55 = vadd.f32 %v766_v43, %v764_v46  ;;  %v774_v56 = vmul.f32 %v773_v47, %v1791_v57  ;;  %v751_v58 = vmul.f32 %v750_v35, %v2016_v0  ;;  %s2162_s6 = sld [smem:[#allocation2 + $0xde]] }
  0x9b   :  { %v713_v53 = vadd.f32 %v712_v13, %v709_v42  ;;  %v740_v54 = vadd.f32 %v739_v27, %v736_v44  ;;  %v778_v40 = vmul.f32 %v777_v48, %v1836_v31  ;;  %v785_v60 = vstv %s2042_s7  ;;  %s2164_s7 = sld [smem:[#allocation2 + $0xdf]] }
  0x9c   :  { %v771_v52 = vadd.f32 %v770_v15, %v767_v55  ;;  %v789_v63 = vstv %s2045_s8  ;;  %v755_v1 = vmul.f32 %v754_v36, %v2057_v38  ;;  %v758_v2 = vstv %s2051_s9  ;;  %s2168_s8 = sld [smem:[#allocation2 + $0xda]]  ;;  %s2173_s9 = sld [smem:[#allocation2 + $0xdb]] }
  0x9d   :  { %v717_v61 = vadd.f32 %v716_v22, %v713_v53  ;;  %v744_v62 = vadd.f32 %v743_v26, %v740_v54  ;;  %v782_v28 = vmul.f32 %v781_v50, %v1881_v6  ;;  %v786_v21 = vmul.f32 %v785_v60, %v1926_v49 }
  0x9e   :  { %v775_v3 = vadd.f32 %v774_v56, %v771_v52  ;;  %v790_v4 = vmul.f32 %v789_v63, %v1971_v23  ;;  %v793_v5 = vstv %s2055_s10  ;;  %v806_v7 = vstv %s2062_s11  ;;  %s2175_s10 = sld [smem:[#allocation2 + $0xe0]]  ;;  %s2180_s11 = sld [smem:[#allocation2 + $0xe1]] }
  0x9f   :  { %v2096_v51 = vmax.f32 %v717_v61, 0.0  ;;  %v748_v17 = vadd.f32 %v747_v45, %v744_v62  ;;  %v812_v8 = vstv %s2064_s12  ;;  %v797_v33 = vstv %s2068_s13  ;;  %s2185_s12 = sld [smem:[#allocation2 + $0xe2]]  ;;  %s2192_s13 = sld [smem:[#allocation2 + $0xeb]] }
  0xa0   :  { %v779_v25 = vadd.f32 %v778_v40, %v775_v3  ;;  %v809_v10 = vstv %s2070_s14  ;;  %v801_v11 = vstv %s2076_s15  ;;  %v807_v12 = vmul.f32 %v806_v7, %v1723_v59  ;;  %s2194_s14 = sld [smem:[#allocation2 + $0xf0]]  ;;  %s2199_s15 = sld [smem:[#allocation2 + $0xe3]] }
  0xa1   :  { %v752_v9 = vadd.f32 %v751_v58, %v748_v17  ;;  %v813_v29 = vmul.f32 %v812_v8, %v1769_v37  ;;  %v816_v13 = vstv %s2078_s16  ;;  %v759_v16 = vmul.f32 %v758_v2, %v2096_v51  ;;  %s2204_s16 = sld [smem:[#allocation2 + $0xe4]] }
  0xa2   :  { %v783_v18 = vadd.f32 %v782_v28, %v779_v25  ;;  %v820_v19 = vstv %s2081_s17  ;;  %v810_v20 = vadd.f32 %v809_v10, %v807_v12  ;;  %v817_v24 = vmul.f32 %v816_v13, %v1791_v57  ;;  %s2206_s17 = sld [smem:[#allocation2 + $0xec]] }
  0xa3   :  { %v756_v14 = vadd.f32 %v755_v1, %v752_v9  ;;  %v824_v22 = vstv %s2086_s18  ;;  %v828_v27 = vstv %s2088_s19  ;;  %v794_v30 = vmul.f32 %v793_v5, %v2016_v0  ;;  %s2213_s18 = sld [smem:[#allocation2 + $0xed]] }
  0xa4   :  { %v787_v26 = vadd.f32 %v786_v21, %v783_v18  ;;  %v798_v32 = vmul.f32 %v797_v33, %v2057_v38  ;;  %v802_v34 = vmul.f32 %v801_v11, %v2096_v51  ;;  %v814_v35 = vadd.f32 %v813_v29, %v810_v20  ;;  %s2218_s19 = sld [smem:[#allocation2 + $0xe5]] }
  0xa5   :  { %v821_v36 = vmul.f32 %v820_v19, %v1836_v31  ;;  %v832_v39 = vstv %s2094_s20  ;;  %v2141_v43 = vadd.f32 %v759_v16, %v756_v14  ;;  %v825_v42 = vmul.f32 %v824_v22, %v1881_v6  ;;  %s1211_s20 = sld [smem:[#allocation2 + $0xee]] }
  0xa6   :  { %v791_v41 = vadd.f32 %v790_v4, %v787_v26  ;;  %v829_v44 = vmul.f32 %v828_v27, %v1926_v49  ;;  %v818_v45 = vadd.f32 %v817_v24, %v814_v35  ;;  %v836_v46 = vstv %s2099_s21  ;;  %s1212_s21 = sld [smem:[#allocation2 + $0xef]] }
  0xa7   :  { %v849_v15 = vstv %s2105_s22  ;;  %v852_v47 = vstv %s2107_s23  ;;  %v840_v50 = vstv %s2111_s24  ;;  %v855_v54 = vstv %s2113_s25  ;;  %s1252_s22 = smov [#allocation5]  }
  0xa8   :  { %v795_v48 = vadd.f32 %v794_v30, %v791_v41  ;;  %v850_v53 = vmul.f32 %v849_v15, %v1723_v59  ;;  %v822_v55 = vadd.f32 %v821_v36, %v818_v45  ;;  %v856_v56 = vmul.f32 %v855_v54, %v1769_v37  ;;  %s964_s23 = sshll.u32 %s1252_s22, 4  ;;  %s965_s23 = int_to_ptr.vmem [resolvable:$true] %s964_s23 }
  0xa9   :  { %v859_v58 = vstv %s2119_s26  ;;  %v863_v40 = vstv %s2121_s27  ;;  %v844_v61 = vstv %s2125_s28  ;;  %v833_v1 = vmul.f32 %v832_v39, %v1971_v23  ;;  %s1225_s24 = scalar_lea.vmem %s965_s23, 16  ;;  %s1229_s25 = scalar_lea.vmem %s965_s23, 32 }
  0xaa   :  { %v799_v60 = vadd.f32 %v798_v32, %v795_v48  ;;  %v853_v62 = vadd.f32 %v852_v47, %v850_v53  ;;  %v860_v52 = vmul.f32 %v859_v58, %v1791_v57  ;;  %v826_v63 = vadd.f32 %v825_v42, %v822_v55  ;;  %p1226_p3 = scmp.ne.s32.totalorder %s965_s23, %s1225_s24  ;;  %p1230_p4 = scmp.lt.s32.totalorder %s965_s23, %s965_s23 }
  0xab   :  { %v867_v2 = vstv %s2130_s29  ;;  %v871_v28 = vstv %s2132_s0  ;;  %v761_v17 = vmax.f32 %v2141_v43, 0.0  ;;  %v864_v21 = vmul.f32 %v863_v40, %v1836_v31  ;;  %p1231_p5 = scmp.lt.s32.totalorder %s1229_s25, %s1225_s24 }
  0xac   :  { %v857_v3 = vadd.f32 %v856_v56, %v853_v62  ;;  %v875_v4 = vstv %s2136_s30  ;;  %v830_v5 = vadd.f32 %v829_v44, %v826_v63  ;;  %v837_v7 = vmul.f32 %v836_v46, %v2016_v0 }
  0xad   :  { %v841_v8 = vmul.f32 %v840_v50, %v2057_v38  ;;  %v845_v9 = vmul.f32 %v844_v61, %v2096_v51  ;;  %v803_v25 = vadd.f32 %v802_v34, %v799_v60  ;;  %v868_v10 = vmul.f32 %v867_v2, %v1881_v6  ;;  %p1232_p6 = por %p1231_p5, %p1230_p4 }
  0xae   :  { %v861_v33 = vadd.f32 %v860_v52, %v857_v3  ;;  %v872_v11 = vmul.f32 %v871_v28, %v1926_v49  ;;  %v834_v12 = vadd.f32 %v833_v1, %v830_v5  ;;  %v876_v29 = vmul.f32 %v875_v4, %v1971_v23 }
  0xaf   :  { %v892_v13 = vstv %s2148_s3  ;;  %v895_v14 = vstv %s2150_s4  ;;  %v879_v18 = vstv %s2155_s5  ;;  %v898_v20 = vstv %s2157_s1  ;;  %p1233_p7 = pnand %p1232_p6, %p1226_p3 }
  0xb0   :  { %v865_v16 = vadd.f32 %v864_v21, %v861_v33  ;;  %v893_v19 = vmul.f32 %v892_v13, %v1723_v59  ;;  %v838_v24 = vadd.f32 %v837_v7, %v834_v12  ;;  %v899_v22 = vmul.f32 %v898_v20, %v1769_v37 }
  0xb1   :  { %v902_v27 = vstv %s2162_s6  ;;  %v906_v26 = vstv %s2164_s7  ;;  %v883_v32 = vstv %s2168_s8  ;;  %v880_v36 = vmul.f32 %v879_v18, %v2016_v0 }
  0xb2   :  { %v869_v30 = vadd.f32 %v868_v10, %v865_v16  ;;  %v896_v34 = vadd.f32 %v895_v14, %v893_v19  ;;  %v903_v59 = vmul.f32 %v902_v27, %v1791_v57  ;;  %v842_v35 = vadd.f32 %v841_v8, %v838_v24 }
  0xb3   :  { %v887_v39 = vstv %s2173_s9  ;;  %v910_v43 = vstv %s2175_s10  ;;  %v907_v42 = vmul.f32 %v906_v26, %v1836_v31  ;;  %v914_v44 = vstv %s2180_s11 }
  0xb4   :  { %v873_v37 = vadd.f32 %v872_v11, %v869_v30  ;;  %v900_v41 = vadd.f32 %v899_v22, %v896_v34  ;;  %v804_v45 = vmax.f32 %v803_v25, 0.0  ;;  %v846_v46 = vadd.f32 %v845_v9, %v842_v35 }
  0xb5   :  { %v918_v15 = vstv %s2185_s12  ;;  %v884_v47 = vmul.f32 %v883_v32, %v2057_v38  ;;  %v911_v50 = vmul.f32 %v910_v43, %v1881_v6  ;;  %v888_v53 = vmul.f32 %v887_v39, %v2096_v51 }
  0xb6   :  { %v877_v57 = vadd.f32 %v876_v29, %v873_v37  ;;  %v904_v48 = vadd.f32 %v903_v59, %v900_v41  ;;  %v915_v54 = vmul.f32 %v914_v44, %v1926_v49  ;;  %v935_v31 = vstv %s2192_s13 }
  0xb7   :  { %v938_v55 = vstv %s2194_s14  ;;  %v919_v40 = vmul.f32 %v918_v15, %v1971_v23  ;;  %v936_v60 = vmul.f32 %v935_v31, %v761_v17  ;;  %v847_v61 = vmax.f32 %v846_v46, 0.0 }
  0xb8   :  { %v881_v56 = vadd.f32 %v880_v36, %v877_v57  ;;  %v908_v58 = vadd.f32 %v907_v42, %v904_v48  ;;  %v922_v62 = vstv %s2199_s15  ;;  %v926_v52 = vstv %s2204_s16 }
  0xb9   :  { %v941_v63 = vstv %s2206_s17  ;;  %v939_v2 = vadd.f32 %v938_v55, %v936_v60  ;;  %v945_v3 = vstv %s2213_s18  ;;  %v923_v4 = vmul.f32 %v922_v62, %v2016_v0 }
  0xba   :  { %v885_v1 = vadd.f32 %v884_v47, %v881_v56  ;;  %v912_v6 = vadd.f32 %v911_v50, %v908_v58  ;;  %v942_v28 = vmul.f32 %v941_v63, %v804_v45  ;;  %v927_v5 = vmul.f32 %v926_v52, %v2057_v38 }
  0xbb   :  { %v930_v7 = vstv %s2218_s19  ;;  %v946_v9 = vmul.f32 %v945_v3, %v847_v61  ;;  %v949_v25 = vstv %s1211_s20  ;;  %v953_v14 = vstv %s1212_s21 }
  0xbc   :  { %v889_v49 = vadd.f32 %v888_v53, %v885_v1  ;;  %v916_v21 = vadd.f32 %v915_v54, %v912_v6  ;;  %v943_v17 = vadd.f32 %v942_v28, %v939_v2  ;;  %v931_v10 = vmul.f32 %v930_v7, %v2096_v51 }
  0xbe   :  { %v890_v8 = vmax.f32 %v889_v49, 0.0  ;;  %v920_v23 = vadd.f32 %v919_v40, %v916_v21  ;;  %v947_v12 = vadd.f32 %v946_v9, %v943_v17 }
  0xc0   :  { %v924_v33 = vadd.f32 %v923_v4, %v920_v23  ;;  %v950_v29 = vmul.f32 %v949_v25, %v890_v8 }
  0xc2   :  { %v928_v11 = vadd.f32 %v927_v5, %v924_v33  ;;  %v951_v18 = vadd.f32 %v950_v29, %v947_v12 }
  0xc4   :  { %v932_v13 = vadd.f32 %v931_v10, %v928_v11 }
  0xc6   :  { %v933_v16 = vmax.f32 %v932_v13, 0.0 }
  0xc8   :  { %v954_v0 = vmul.f32 %v953_v14, %v933_v16 }
  0xca   :  { %v955_v38 = vadd.f32 %v954_v0, %v951_v18 }
  0xcc   :  { %957 = vst.msk [vmem:[#allocation5] sm:$0x1] %vm956_vm0, %v955_v38 }
  0xcd   :  { %1236 = shalt.err (!%p1233_p7)
}
  0xce   :  { %s1237_s28 = scalar_lea.hbm %s2249_s2, 16 }
  0xcf   :  { %p1238_p8 = scmp.ne.s32.totalorder %s2249_s2, %s1237_s28  ;;  %p1241_p9 = scmp.lt.u32.totalorder %s1237_s28, %s2249_s2 }
  0xd1   :  { %p1243_p10 = pnand %p1241_p9, %p1238_p8 }
  0xd3   :  { %1246 = shalt.err (!%p1243_p10)
}
  0xd4   :  { %967 = dma.vmem_to_hbm [thread:$0]  %s965_s23, 16, %s2249_s2, [#allocation3]  }
  0xd5   :  { %1249 = dma.done.wait [#allocation3], 16  }
  0xd6   :  { %1250 = vsyncadd [#allocation3], 4294967280 }
  0xd7   :  { %971 = vsyncpa [#allocation3], 1 }
  0xd8   :  { %972 = vsyncpa [#allocation4], 1 }

</bundles_post_ra>
